<compile_context>
chip_gen: v7x
topology: tpu7x:2x2x1
jax: 0.10.0
libtpu: 0.0.40
codegen_flags: <defaults>
</compile_context>

<pallas_src>
import functools

import jax
import jax.numpy as jnp
from jax import lax
from jax.experimental import pallas as pl
from jax.experimental.pallas import tpu as pltpu


def _resblock_kernel(ph_ref, w1_ref, b1_ref, w2_ref, b2_ref, out_ref,
                     cols1_ref, h1pad_ref, cols2_ref, *,
                     stride, cin, cout, has_projection):
    """One batch-block of the residual block.

    ph_ref   : (Nb, s*s, Hp, Wp, Cin)  padded input, phase-decimated by stride
               (f32 for identity blocks, bf16 for projection blocks)
    w1_ref   : (9*Cin, Nout1) bf16     conv1 weight, taps flattened into K;
               Nout1 = 2*Cout when the 1x1 projection is fused in (its weight
               occupies the centre-tap rows of columns [Cout:2*Cout])
    b1_ref   : (1, Nout1) f32          [b1 | bs]
    w2_ref   : (9*Cout, Cout) bf16
    b2_ref   : (1, Cout) f32
    out_ref  : (Nb, Ho, Wo, Cout) f32
    cols1_ref: (Nb, Ho, Wo, 9*Cin)  bf16 scratch   (conv1 im2col)
    h1pad_ref: (Nb, Ho+2, Wo+2, Cout) bf16 scratch (zero-haloed relu(conv1))
    cols2_ref: (Nb, Ho, Wo, 9*Cout) bf16 scratch   (conv2 im2col)
    """
    nb, ho, wo, _ = out_ref.shape
    s = stride
    m = nb * ho * wo
    mxu_dt = cols1_ref.dtype

    # ---- conv1 im2col assembled in VMEM from the phase-decimated padded input.
    # Tap (kh, kw) of the stride-s conv reads phase (kh%s, kw%s) at offset
    # (kh//s, kw//s): every copy below is a unit-stride, full-extent slice.
    for kh in range(3):
        for kw in range(3):
            t = kh * 3 + kw
            phase = (kh % s) * s + (kw % s)
            a, b = kh // s, kw // s
            cols1_ref[:, :, :, t * cin:(t + 1) * cin] = (
                ph_ref[:, phase, a:a + ho, b:b + wo, :].astype(mxu_dt))

    # ---- conv1 (+ fused 1x1 projection): one MXU matmul, K = 9*Cin ----------
    acc1 = jnp.dot(cols1_ref[...].reshape(m, 9 * cin), w1_ref[...],
                   preferred_element_type=jnp.float32)
    acc1 = acc1 + b1_ref[...]
    h1 = jnp.maximum(acc1[:, :cout], 0.0)                 # (M, Cout) f32

    if has_projection:
        sc = acc1[:, cout:2 * cout]                       # fused 1x1 shortcut
    else:
        # identity shortcut: exact f32 centre-tap read of the unpadded input
        sc = ph_ref[:, 0, 1:1 + ho, 1:1 + wo, :].reshape(m, cout)

    # ---- conv2 im2col: h1 -> zero-HALOED padded scratch, then 9 tap copies ---
    # Only the 1-pixel border strips are zeroed (re-done every step so the
    # kernel stays correct under megacore grid splits); the interior is written
    # exactly once, and every element of cols2 is written exactly once.
    zr = jnp.zeros((nb, 1, wo + 2, cout), h1pad_ref.dtype)
    h1pad_ref[:, 0:1, :, :] = zr
    h1pad_ref[:, ho + 1:ho + 2, :, :] = zr
    zc = jnp.zeros((nb, ho, 1, cout), h1pad_ref.dtype)
    h1pad_ref[:, 1:1 + ho, 0:1, :] = zc
    h1pad_ref[:, 1:1 + ho, wo + 1:wo + 2, :] = zc
    h1pad_ref[:, 1:1 + ho, 1:1 + wo, :] = (
        h1.reshape(nb, ho, wo, cout).astype(h1pad_ref.dtype))

    for kh in range(3):
        for kw in range(3):
            t = kh * 3 + kw
            cols2_ref[:, :, :, t * cout:(t + 1) * cout] = (
                h1pad_ref[:, kh:kh + ho, kw:kw + wo, :])

    # ---- conv2: one MXU matmul, K = 9*Cout -----------------------------------
    acc2 = jnp.dot(cols2_ref[...].reshape(m, 9 * cout), w2_ref[...],
                   preferred_element_type=jnp.float32)
    acc2 = acc2 + b2_ref[...]

    # ---- residual add + ReLU --------------------------------------------------
    y = jnp.maximum(acc2 + sc, 0.0)
    out_ref[...] = y.reshape(nb, ho, wo, cout).astype(out_ref.dtype)


def residual_block(x_nchw, params, *, stride, mxu_dtype=jnp.bfloat16,
                   vmem_budget_bytes=24 * 1024 * 1024):
    """Pallas implementation of ResidualBlock.forward. Accepts/returns NCHW."""
    N, Cin, H, W = x_nchw.shape
    Cout = params["w1"].shape[-1]
    s = stride
    Ho = (H - 1) // s + 1
    Wo = (W - 1) // s + 1
    has_projection = (s != 1) or (Cin != Cout)

    # --- NCHW -> NHWC once at the module boundary, zero-pad, phase-decimate ----
    x = jnp.transpose(x_nchw, (0, 2, 3, 1)).astype(jnp.float32)
    hp_tot = -(-(H + 2) // s) * s                 # padded dims rounded up to s
    wp_tot = -(-(W + 2) // s) * s
    xpad = jnp.pad(x, ((0, 0), (1, hp_tot - H - 1), (1, wp_tot - W - 1), (0, 0)))
    Hp, Wp = hp_tot // s, wp_tot // s
    # ph[n, p*s+q, i, j, c] = xpad[n, i*s+p, j*s+q, c]   (1x data, one XLA fusion)
    ph = xpad.reshape(N, Hp, s, Wp, s, Cin).transpose(0, 2, 4, 1, 3, 5)
    ph = ph.reshape(N, s * s, Hp, Wp, Cin)
    ph_dtype = mxu_dtype if has_projection else jnp.float32   # f32 => exact identity
    ph = ph.astype(ph_dtype)

    # --- weights: taps flattened into K; 1x1 projection fused into conv1's N ---
    w1c = params["w1"].reshape(9 * Cin, Cout)
    b1 = params["b1"].reshape(1, Cout)
    if has_projection:
        ws_emb = jnp.zeros((9 * Cin, Cout), params["ws"].dtype)
        ws_emb = ws_emb.at[4 * Cin:5 * Cin, :].set(params["ws"])   # centre tap
        w1c = jnp.concatenate([w1c, ws_emb], axis=1)               # (9*Cin, 2*Cout)
        b1 = jnp.concatenate([b1, params["bs"].reshape(1, Cout)], axis=1)
    w1c = w1c.astype(mxu_dtype)
    b1 = b1.astype(jnp.float32)
    w2c = params["w2"].reshape(9 * Cout, Cout).astype(mxu_dtype)
    b2 = params["b2"].reshape(1, Cout).astype(jnp.float32)
    nout1 = w1c.shape[1]

    # --- batch blocking: Nb samples per grid step from a per-step VMEM budget --
    ph_bpe = 4 if ph_dtype == jnp.float32 else 2
    per_sample = (2 * s * s * Hp * Wp * Cin * ph_bpe       # input block (dbl-buf)
                  + 2 * Ho * Wo * Cout * 4                 # output block (dbl-buf)
                  + Ho * Wo * 9 * Cin * 2                  # cols1 scratch (bf16)
                  + Ho * Wo * 9 * Cout * 2                 # cols2 scratch (bf16)
                  + (Ho + 2) * (Wo + 2) * Cout * 2)        # h1pad scratch (bf16)
    min_steps = min(N, 4)                                  # keep pipelining depth
    cap = max(1, min(vmem_budget_bytes // max(per_sample, 1), N // min_steps))
    nb = max(d for d in range(1, N + 1) if N % d == 0 and d <= cap)
    grid = (N // nb,)

    kernel = functools.partial(_resblock_kernel, stride=s, cin=Cin, cout=Cout,
                               has_projection=has_projection)

    out_nhwc = pl.pallas_call(
        kernel,
        out_shape=jax.ShapeDtypeStruct((N, Ho, Wo, Cout), jnp.float32),
        grid=grid,
        in_specs=[
            pl.BlockSpec((nb, s * s, Hp, Wp, Cin), lambda n: (n, 0, 0, 0, 0)),
            pl.BlockSpec((9 * Cin, nout1), lambda n: (0, 0)),
            pl.BlockSpec((1, nout1), lambda n: (0, 0)),
            pl.BlockSpec((9 * Cout, Cout), lambda n: (0, 0)),
            pl.BlockSpec((1, Cout), lambda n: (0, 0)),
        ],
        out_specs=pl.BlockSpec((nb, Ho, Wo, Cout), lambda n: (n, 0, 0, 0)),
        scratch_shapes=[
            pltpu.VMEM((nb, Ho, Wo, 9 * Cin), mxu_dtype),
            pltpu.VMEM((nb, Ho + 2, Wo + 2, Cout), mxu_dtype),
            pltpu.VMEM((nb, Ho, Wo, 9 * Cout), mxu_dtype),
        ],
        compiler_params=pltpu.CompilerParams(
            dimension_semantics=("parallel",),
            vmem_limit_bytes=32 * 1024 * 1024),
    )(ph, w1c, b1, w2c, b2)

    # NHWC -> NCHW to match the PyTorch module's output convention.
    return jnp.transpose(out_nhwc, (0, 3, 1, 2))


def _reference(x_nchw, params, *, stride):
    """Pure-JAX f32 reference using lax.conv (NCHW / OIHW), mirrors PyTorch."""
    def conv(x, w_hwio, b, s, pad):
        w_oihw = jnp.transpose(w_hwio, (3, 2, 0, 1))
        y = lax.conv_general_dilated(
            x, w_oihw, window_strides=(s, s),
            padding=[(pad, pad), (pad, pad)],
            dimension_numbers=("NCHW", "OIHW", "NCHW"))
        return y + b.reshape(1, -1, 1, 1)

    Cin = x_nchw.shape[1]
    Cout = params["w1"].shape[-1]
    y = conv(x_nchw, params["w1"], params["b1"], stride, 1)
    y = jnp.maximum(y, 0.0)
    y = conv(y, params["w2"], params["b2"], 1, 1)
    if stride != 1 or Cin != Cout:
        ws = params["ws"].reshape(1, 1, Cin, Cout)
        sc = conv(x_nchw, ws, params["bs"], stride, 0)
    else:
        sc = x_nchw
    return jnp.maximum(y + sc, 0.0)


def _make_params(key, cin, cout, projection):
    ks = jax.random.split(key, 6)
    p = {
        "w1": 0.1 * jax.random.normal(ks[0], (3, 3, cin, cout), jnp.float32),
        "b1": 0.1 * jax.random.normal(ks[1], (cout,), jnp.float32),
        "w2": 0.1 * jax.random.normal(ks[2], (3, 3, cout, cout), jnp.float32),
        "b2": 0.1 * jax.random.normal(ks[3], (cout,), jnp.float32),
    }
    if projection:
        p["ws"] = 0.1 * jax.random.normal(ks[4], (cin, cout), jnp.float32)
        p["bs"] = 0.1 * jax.random.normal(ks[5], (cout,), jnp.float32)
    return p


if __name__ == "__main__":
    key = jax.random.PRNGKey(0)
    k1, k2, k3, k4 = jax.random.split(key, 4)

    # Case 1: downsampling block (stride=2, Cin!=Cout) -> fused 1x1 projection.
    params1 = _make_params(k1, 4, 8, True)
    x1 = jax.random.normal(k2, (2, 4, 16, 16), jnp.float32)
    out1 = jax.block_until_ready(residual_block(x1, params1, stride=2))
    ref1 = _reference(x1, params1, stride=2)
    assert out1.shape == ref1.shape, (out1.shape, ref1.shape)
    err1 = float(jnp.max(jnp.abs(out1 - ref1)))
    assert err1 < 5e-2, err1          # bf16 MXU operands, f32 accumulation
    assert float(jnp.mean(jnp.abs(out1 - ref1))) < 5e-3

    # Case 2: identity shortcut (stride=1, Cin==Cout) -> exact f32 residual.
    params2 = _make_params(k3, 8, 8, False)
    x2 = jax.random.normal(k4, (2, 8, 16, 16), jnp.float32)
    out2 = jax.block_until_ready(residual_block(x2, params2, stride=1))
    ref2 = _reference(x2, params2, stride=1)
    assert out2.shape == ref2.shape, (out2.shape, ref2.shape)
    err2 = float(jnp.max(jnp.abs(out2 - ref2)))
    assert err2 < 5e-2, err2
    assert float(jnp.mean(jnp.abs(out2 - ref2))) < 5e-3

    print("KERNEL_OK")
</pallas_src>

<mosaic_0001>
module attributes {stable_mosaic.version = 11 : i64} {
  func.func @_resblock_kernel(%arg0: i32, %arg1: memref<1x4x9x9x4xbf16, #tpu.memory_space<vmem>>, %arg2: memref<36x16xbf16, #tpu.memory_space<vmem>>, %arg3: memref<1x16xf32, #tpu.memory_space<vmem>>, %arg4: memref<72x8xbf16, #tpu.memory_space<vmem>>, %arg5: memref<1x8xf32, #tpu.memory_space<vmem>>, %arg6: memref<1x8x8x8xf32, #tpu.memory_space<vmem>>, %arg7: memref<1x8x8x36xbf16, #tpu.memory_space<vmem>>, %arg8: memref<1x10x10x8xbf16, #tpu.memory_space<vmem>>, %arg9: memref<1x8x8x72xbf16, #tpu.memory_space<vmem>>) attributes {dimension_semantics = [#tpu.dimension_semantics<parallel>], iteration_bounds = array<i64: 2>, scalar_prefetch = 0 : i64, scratch_operands = 3 : i64, tpu.core_type = #tpu.core_type<tc>, window_params = [{transform_indices = @transform_0, window_bounds = array<i64: 1, 4, 9, 9, 4>}, {pipeline_mode = #tpu.pipeline_mode<synchronous>, transform_indices = @transform_1, window_bounds = array<i64: 36, 16>}, {pipeline_mode = #tpu.pipeline_mode<synchronous>, transform_indices = @transform_2, window_bounds = array<i64: 1, 16>}, {pipeline_mode = #tpu.pipeline_mode<synchronous>, transform_indices = @transform_3, window_bounds = array<i64: 72, 8>}, {pipeline_mode = #tpu.pipeline_mode<synchronous>, transform_indices = @transform_4, window_bounds = array<i64: 1, 8>}, {transform_indices = @transform_5, window_bounds = array<i64: 1, 8, 8, 8>}]} {
    %c0 = arith.constant 0 : index
    %c0_0 = arith.constant 0 : index
    %c0_1 = arith.constant 0 : index
    %c0_2 = arith.constant 0 : index
    %c0_3 = arith.constant 0 : index
    %0 = vector.load %arg1[%c0, %c0_0, %c0_1, %c0_2, %c0_3] : memref<1x4x9x9x4xbf16, #tpu.memory_space<vmem>>, vector<1x1x8x8x4xbf16>
    %1 = vector.shape_cast %0 : vector<1x1x8x8x4xbf16> to vector<1x8x8x4xbf16>
    %c0_4 = arith.constant 0 : index
    %c0_5 = arith.constant 0 : index
    %c0_6 = arith.constant 0 : index
    %c0_7 = arith.constant 0 : index
    %2 = vector.load %arg7[%c0_4, %c0_5, %c0_6, %c0_7] : memref<1x8x8x36xbf16, #tpu.memory_space<vmem>>, vector<1x8x8x4xbf16>
    tpu.vector_store %arg7[%c0_4, %c0_5, %c0_6, %c0_7], %1 {strides = array<i32>} : memref<1x8x8x36xbf16, #tpu.memory_space<vmem>>, vector<1x8x8x4xbf16>,
    %c0_8 = arith.constant 0 : index
    %c1 = arith.constant 1 : index
    %c0_9 = arith.constant 0 : index
    %c0_10 = arith.constant 0 : index
    %c0_11 = arith.constant 0 : index
    %3 = vector.load %arg1[%c0_8, %c1, %c0_9, %c0_10, %c0_11] : memref<1x4x9x9x4xbf16, #tpu.memory_space<vmem>>, vector<1x1x8x8x4xbf16>
    %4 = vector.shape_cast %3 : vector<1x1x8x8x4xbf16> to vector<1x8x8x4xbf16>
    %c0_12 = arith.constant 0 : index
    %c0_13 = arith.constant 0 : index
    %c0_14 = arith.constant 0 : index
    %c4 = arith.constant 4 : index
    %5 = vector.load %arg7[%c0_12, %c0_13, %c0_14, %c4] : memref<1x8x8x36xbf16, #tpu.memory_space<vmem>>, vector<1x8x8x4xbf16>
    tpu.vector_store %arg7[%c0_12, %c0_13, %c0_14, %c4], %4 {strides = array<i32>} : memref<1x8x8x36xbf16, #tpu.memory_space<vmem>>, vector<1x8x8x4xbf16>,
    %c0_15 = arith.constant 0 : index
    %c0_16 = arith.constant 0 : index
    %c0_17 = arith.constant 0 : index
    %c1_18 = arith.constant 1 : index
    %c0_19 = arith.constant 0 : index
    %6 = vector.load %arg1[%c0_15, %c0_16, %c0_17, %c1_18, %c0_19] : memref<1x4x9x9x4xbf16, #tpu.memory_space<vmem>>, vector<1x1x8x8x4xbf16>
    %7 = vector.shape_cast %6 : vector<1x1x8x8x4xbf16> to vector<1x8x8x4xbf16>
    %c0_20 = arith.constant 0 : index
    %c0_21 = arith.constant 0 : index
    %c0_22 = arith.constant 0 : index
    %c8 = arith.constant 8 : index
    %8 = vector.load %arg7[%c0_20, %c0_21, %c0_22, %c8] : memref<1x8x8x36xbf16, #tpu.memory_space<vmem>>, vector<1x8x8x4xbf16>
    tpu.vector_store %arg7[%c0_20, %c0_21, %c0_22, %c8], %7 {strides = array<i32>} : memref<1x8x8x36xbf16, #tpu.memory_space<vmem>>, vector<1x8x8x4xbf16>,
    %c0_23 = arith.constant 0 : index
    %c2 = arith.constant 2 : index
    %c0_24 = arith.constant 0 : index
    %c0_25 = arith.constant 0 : index
    %c0_26 = arith.constant 0 : index
    %9 = vector.load %arg1[%c0_23, %c2, %c0_24, %c0_25, %c0_26] : memref<1x4x9x9x4xbf16, #tpu.memory_space<vmem>>, vector<1x1x8x8x4xbf16>
    %10 = vector.shape_cast %9 : vector<1x1x8x8x4xbf16> to vector<1x8x8x4xbf16>
    %c0_27 = arith.constant 0 : index
    %c0_28 = arith.constant 0 : index
    %c0_29 = arith.constant 0 : index
    %c12 = arith.constant 12 : index
    %11 = vector.load %arg7[%c0_27, %c0_28, %c0_29, %c12] : memref<1x8x8x36xbf16, #tpu.memory_space<vmem>>, vector<1x8x8x4xbf16>
    tpu.vector_store %arg7[%c0_27, %c0_28, %c0_29, %c12], %10 {strides = array<i32>} : memref<1x8x8x36xbf16, #tpu.memory_space<vmem>>, vector<1x8x8x4xbf16>,
    %c0_30 = arith.constant 0 : index
    %c3 = arith.constant 3 : index
    %c0_31 = arith.constant 0 : index
    %c0_32 = arith.constant 0 : index
    %c0_33 = arith.constant 0 : index
    %12 = vector.load %arg1[%c0_30, %c3, %c0_31, %c0_32, %c0_33] : memref<1x4x9x9x4xbf16, #tpu.memory_space<vmem>>, vector<1x1x8x8x4xbf16>
    %13 = vector.shape_cast %12 : vector<1x1x8x8x4xbf16> to vector<1x8x8x4xbf16>
    %c0_34 = arith.constant 0 : index
    %c0_35 = arith.constant 0 : index
    %c0_36 = arith.constant 0 : index
    %c16 = arith.constant 16 : index
    %14 = vector.load %arg7[%c0_34, %c0_35, %c0_36, %c16] : memref<1x8x8x36xbf16, #tpu.memory_space<vmem>>, vector<1x8x8x4xbf16>
    tpu.vector_store %arg7[%c0_34, %c0_35, %c0_36, %c16], %13 {strides = array<i32>} : memref<1x8x8x36xbf16, #tpu.memory_space<vmem>>, vector<1x8x8x4xbf16>,
    %c0_37 = arith.constant 0 : index
    %c2_38 = arith.constant 2 : index
    %c0_39 = arith.constant 0 : index
    %c1_40 = arith.constant 1 : index
    %c0_41 = arith.constant 0 : index
    %15 = vector.load %arg1[%c0_37, %c2_38, %c0_39, %c1_40, %c0_41] : memref<1x4x9x9x4xbf16, #tpu.memory_space<vmem>>, vector<1x1x8x8x4xbf16>
    %16 = vector.shape_cast %15 : vector<1x1x8x8x4xbf16> to vector<1x8x8x4xbf16>
    %c0_42 = arith.constant 0 : index
    %c0_43 = arith.constant 0 : index
    %c0_44 = arith.constant 0 : index
    %c20 = arith.constant 20 : index
    %17 = vector.load %arg7[%c0_42, %c0_43, %c0_44, %c20] : memref<1x8x8x36xbf16, #tpu.memory_space<vmem>>, vector<1x8x8x4xbf16>
    tpu.vector_store %arg7[%c0_42, %c0_43, %c0_44, %c20], %16 {strides = array<i32>} : memref<1x8x8x36xbf16, #tpu.memory_space<vmem>>, vector<1x8x8x4xbf16>,
    %c0_45 = arith.constant 0 : index
    %c0_46 = arith.constant 0 : index
    %c1_47 = arith.constant 1 : index
    %c0_48 = arith.constant 0 : index
    %c0_49 = arith.constant 0 : index
    %18 = vector.load %arg1[%c0_45, %c0_46, %c1_47, %c0_48, %c0_49] : memref<1x4x9x9x4xbf16, #tpu.memory_space<vmem>>, vector<1x1x8x8x4xbf16>
    %19 = vector.shape_cast %18 : vector<1x1x8x8x4xbf16> to vector<1x8x8x4xbf16>
    %c0_50 = arith.constant 0 : index
    %c0_51 = arith.constant 0 : index
    %c0_52 = arith.constant 0 : index
    %c24 = arith.constant 24 : index
    %20 = vector.load %arg7[%c0_50, %c0_51, %c0_52, %c24] : memref<1x8x8x36xbf16, #tpu.memory_space<vmem>>, vector<1x8x8x4xbf16>
    tpu.vector_store %arg7[%c0_50, %c0_51, %c0_52, %c24], %19 {strides = array<i32>} : memref<1x8x8x36xbf16, #tpu.memory_space<vmem>>, vector<1x8x8x4xbf16>,
    %c0_53 = arith.constant 0 : index
    %c1_54 = arith.constant 1 : index
    %c1_55 = arith.constant 1 : index
    %c0_56 = arith.constant 0 : index
    %c0_57 = arith.constant 0 : index
    %21 = vector.load %arg1[%c0_53, %c1_54, %c1_55, %c0_56, %c0_57] : memref<1x4x9x9x4xbf16, #tpu.memory_space<vmem>>, vector<1x1x8x8x4xbf16>
    %22 = vector.shape_cast %21 : vector<1x1x8x8x4xbf16> to vector<1x8x8x4xbf16>
    %c0_58 = arith.constant 0 : index
    %c0_59 = arith.constant 0 : index
    %c0_60 = arith.constant 0 : index
    %c28 = arith.constant 28 : index
    %23 = vector.load %arg7[%c0_58, %c0_59, %c0_60, %c28] : memref<1x8x8x36xbf16, #tpu.memory_space<vmem>>, vector<1x8x8x4xbf16>
    tpu.vector_store %arg7[%c0_58, %c0_59, %c0_60, %c28], %22 {strides = array<i32>} : memref<1x8x8x36xbf16, #tpu.memory_space<vmem>>, vector<1x8x8x4xbf16>,
    %c0_61 = arith.constant 0 : index
    %c0_62 = arith.constant 0 : index
    %c1_63 = arith.constant 1 : index
    %c1_64 = arith.constant 1 : index
    %c0_65 = arith.constant 0 : index
    %24 = vector.load %arg1[%c0_61, %c0_62, %c1_63, %c1_64, %c0_65] : memref<1x4x9x9x4xbf16, #tpu.memory_space<vmem>>, vector<1x1x8x8x4xbf16>
    %25 = vector.shape_cast %24 : vector<1x1x8x8x4xbf16> to vector<1x8x8x4xbf16>
    %c0_66 = arith.constant 0 : index
    %c0_67 = arith.constant 0 : index
    %c0_68 = arith.constant 0 : index
    %c32 = arith.constant 32 : index
    %26 = vector.load %arg7[%c0_66, %c0_67, %c0_68, %c32] : memref<1x8x8x36xbf16, #tpu.memory_space<vmem>>, vector<1x8x8x4xbf16>
    tpu.vector_store %arg7[%c0_66, %c0_67, %c0_68, %c32], %25 {strides = array<i32>} : memref<1x8x8x36xbf16, #tpu.memory_space<vmem>>, vector<1x8x8x4xbf16>,
    %c0_69 = arith.constant 0 : index
    %c0_70 = arith.constant 0 : index
    %c0_71 = arith.constant 0 : index
    %c0_72 = arith.constant 0 : index
    %27 = vector.load %arg7[%c0_69, %c0_70, %c0_71, %c0_72] : memref<1x8x8x36xbf16, #tpu.memory_space<vmem>>, vector<1x8x8x36xbf16>
    %28 = vector.shape_cast %27 : vector<1x8x8x36xbf16> to vector<64x36xbf16>
    %c0_73 = arith.constant 0 : index
    %c0_74 = arith.constant 0 : index
    %29 = vector.load %arg2[%c0_73, %c0_74] : memref<36x16xbf16, #tpu.memory_space<vmem>>, vector<36x16xbf16>
    %cst = arith.constant dense<0.000000e+00> : vector<64x16xf32>
    %30 = tpu.matmul %28, %29, %cst {dimension_numbers = #tpu.dot_dimension_numbers<[1], [0], [0], [1], [0, 0, 1, 1], [], []>} : vector<64x36xbf16>, vector<36x16xbf16>, vector<64x16xf32> -> vector<64x16xf32>
    %c0_75 = arith.constant 0 : index
    %c0_76 = arith.constant 0 : index
    %31 = vector.load %arg3[%c0_75, %c0_76] : memref<1x16xf32, #tpu.memory_space<vmem>>, vector<1x16xf32>
    %32 = vector.broadcast %31 : vector<1x16xf32> to vector<64x16xf32>
    %33 = arith.addf %30, %32 : vector<64x16xf32>
    %34 = vector.extract_strided_slice %33 {offsets = [0, 0], sizes = [64, 8], strides = [1, 1]} : vector<64x16xf32> to vector<64x8xf32>
    %cst_77 = arith.constant 0.000000e+00 : f32
    %35 = vector.broadcast %cst_77 : f32 to vector<64x8xf32>
    %36 = arith.maximumf %34, %35 : vector<64x8xf32>
    %37 = vector.extract_strided_slice %33 {offsets = [0, 8], sizes = [64, 8], strides = [1, 1]} : vector<64x16xf32> to vector<64x8xf32>
    %cst_78 = arith.constant 0.000000e+00 : bf16
    %38 = vector.broadcast %cst_78 : bf16 to vector<1x1x10x8xbf16>
    %c0_79 = arith.constant 0 : index
    %c0_80 = arith.constant 0 : index
    %c0_81 = arith.constant 0 : index
    %c0_82 = arith.constant 0 : index
    %39 = vector.load %arg8[%c0_79, %c0_80, %c0_81, %c0_82] : memref<1x10x10x8xbf16, #tpu.memory_space<vmem>>, vector<1x1x10x8xbf16>
    tpu.vector_store %arg8[%c0_79, %c0_80, %c0_81, %c0_82], %38 {strides = array<i32>} : memref<1x10x10x8xbf16, #tpu.memory_space<vmem>>, vector<1x1x10x8xbf16>,
    %c0_83 = arith.constant 0 : index
    %c9 = arith.constant 9 : index
    %c0_84 = arith.constant 0 : index
    %c0_85 = arith.constant 0 : index
    %40 = vector.load %arg8[%c0_83, %c9, %c0_84, %c0_85] : memref<1x10x10x8xbf16, #tpu.memory_space<vmem>>, vector<1x1x10x8xbf16>
    tpu.vector_store %arg8[%c0_83, %c9, %c0_84, %c0_85], %38 {strides = array<i32>} : memref<1x10x10x8xbf16, #tpu.memory_space<vmem>>, vector<1x1x10x8xbf16>,
    %cst_86 = arith.constant 0.000000e+00 : bf16
    %41 = vector.broadcast %cst_86 : bf16 to vector<1x8x1x8xbf16>
    %c0_87 = arith.constant 0 : index
    %c1_88 = arith.constant 1 : index
    %c0_89 = arith.constant 0 : index
    %c0_90 = arith.constant 0 : index
    %42 = vector.load %arg8[%c0_87, %c1_88, %c0_89, %c0_90] : memref<1x10x10x8xbf16, #tpu.memory_space<vmem>>, vector<1x8x1x8xbf16>
    tpu.vector_store %arg8[%c0_87, %c1_88, %c0_89, %c0_90], %41 {strides = array<i32>} : memref<1x10x10x8xbf16, #tpu.memory_space<vmem>>, vector<1x8x1x8xbf16>,
    %c0_91 = arith.constant 0 : index
    %c1_92 = arith.constant 1 : index
    %c9_93 = arith.constant 9 : index
    %c0_94 = arith.constant 0 : index
    %43 = vector.load %arg8[%c0_91, %c1_92, %c9_93, %c0_94] : memref<1x10x10x8xbf16, #tpu.memory_space<vmem>>, vector<1x8x1x8xbf16>
    tpu.vector_store %arg8[%c0_91, %c1_92, %c9_93, %c0_94], %41 {strides = array<i32>} : memref<1x10x10x8xbf16, #tpu.memory_space<vmem>>, vector<1x8x1x8xbf16>,
    %44 = vector.shape_cast %36 : vector<64x8xf32> to vector<1x8x8x8xf32>
    %45 = arith.truncf %44 : vector<1x8x8x8xf32> to vector<1x8x8x8xbf16>
    %c0_95 = arith.constant 0 : index
    %c1_96 = arith.constant 1 : index
    %c1_97 = arith.constant 1 : index
    %c0_98 = arith.constant 0 : index
    %46 = vector.load %arg8[%c0_95, %c1_96, %c1_97, %c0_98] : memref<1x10x10x8xbf16, #tpu.memory_space<vmem>>, vector<1x8x8x8xbf16>
    tpu.vector_store %arg8[%c0_95, %c1_96, %c1_97, %c0_98], %45 {strides = array<i32>} : memref<1x10x10x8xbf16, #tpu.memory_space<vmem>>, vector<1x8x8x8xbf16>,
    %c0_99 = arith.constant 0 : index
    %c0_100 = arith.constant 0 : index
    %c0_101 = arith.constant 0 : index
    %c0_102 = arith.constant 0 : index
    %47 = vector.load %arg8[%c0_99, %c0_100, %c0_101, %c0_102] : memref<1x10x10x8xbf16, #tpu.memory_space<vmem>>, vector<1x8x8x8xbf16>
    %c0_103 = arith.constant 0 : index
    %c0_104 = arith.constant 0 : index
    %c0_105 = arith.constant 0 : index
    %c0_106 = arith.constant 0 : index
    %48 = vector.load %arg9[%c0_103, %c0_104, %c0_105, %c0_106] : memref<1x8x8x72xbf16, #tpu.memory_space<vmem>>, vector<1x8x8x8xbf16>
    tpu.vector_store %arg9[%c0_103, %c0_104, %c0_105, %c0_106], %47 {strides = array<i32>} : memref<1x8x8x72xbf16, #tpu.memory_space<vmem>>, vector<1x8x8x8xbf16>,
    %c0_107 = arith.constant 0 : index
    %c0_108 = arith.constant 0 : index
    %c1_109 = arith.constant 1 : index
    %c0_110 = arith.constant 0 : index
    %49 = vector.load %arg8[%c0_107, %c0_108, %c1_109, %c0_110] : memref<1x10x10x8xbf16, #tpu.memory_space<vmem>>, vector<1x8x8x8xbf16>
    %c0_111 = arith.constant 0 : index
    %c0_112 = arith.constant 0 : index
    %c0_113 = arith.constant 0 : index
    %c8_114 = arith.constant 8 : index
    %50 = vector.load %arg9[%c0_111, %c0_112, %c0_113, %c8_114] : memref<1x8x8x72xbf16, #tpu.memory_space<vmem>>, vector<1x8x8x8xbf16>
    tpu.vector_store %arg9[%c0_111, %c0_112, %c0_113, %c8_114], %49 {strides = array<i32>} : memref<1x8x8x72xbf16, #tpu.memory_space<vmem>>, vector<1x8x8x8xbf16>,
    %c0_115 = arith.constant 0 : index
    %c0_116 = arith.constant 0 : index
    %c2_117 = arith.constant 2 : index
    %c0_118 = arith.constant 0 : index
    %51 = vector.load %arg8[%c0_115, %c0_116, %c2_117, %c0_118] : memref<1x10x10x8xbf16, #tpu.memory_space<vmem>>, vector<1x8x8x8xbf16>
    %c0_119 = arith.constant 0 : index
    %c0_120 = arith.constant 0 : index
    %c0_121 = arith.constant 0 : index
    %c16_122 = arith.constant 16 : index
    %52 = vector.load %arg9[%c0_119, %c0_120, %c0_121, %c16_122] : memref<1x8x8x72xbf16, #tpu.memory_space<vmem>>, vector<1x8x8x8xbf16>
    tpu.vector_store %arg9[%c0_119, %c0_120, %c0_121, %c16_122], %51 {strides = array<i32>} : memref<1x8x8x72xbf16, #tpu.memory_space<vmem>>, vector<1x8x8x8xbf16>,
    %c0_123 = arith.constant 0 : index
    %c1_124 = arith.constant 1 : index
    %c0_125 = arith.constant 0 : index
    %c0_126 = arith.constant 0 : index
    %53 = vector.load %arg8[%c0_123, %c1_124, %c0_125, %c0_126] : memref<1x10x10x8xbf16, #tpu.memory_space<vmem>>, vector<1x8x8x8xbf16>
    %c0_127 = arith.constant 0 : index
    %c0_128 = arith.constant 0 : index
    %c0_129 = arith.constant 0 : index
    %c24_130 = arith.constant 24 : index
    %54 = vector.load %arg9[%c0_127, %c0_128, %c0_129, %c24_130] : memref<1x8x8x72xbf16, #tpu.memory_space<vmem>>, vector<1x8x8x8xbf16>
    tpu.vector_store %arg9[%c0_127, %c0_128, %c0_129, %c24_130], %53 {strides = array<i32>} : memref<1x8x8x72xbf16, #tpu.memory_space<vmem>>, vector<1x8x8x8xbf16>,
    %c0_131 = arith.constant 0 : index
    %c1_132 = arith.constant 1 : index
    %c1_133 = arith.constant 1 : index
    %c0_134 = arith.constant 0 : index
    %55 = vector.load %arg8[%c0_131, %c1_132, %c1_133, %c0_134] : memref<1x10x10x8xbf16, #tpu.memory_space<vmem>>, vector<1x8x8x8xbf16>
    %c0_135 = arith.constant 0 : index
    %c0_136 = arith.constant 0 : index
    %c0_137 = arith.constant 0 : index
    %c32_138 = arith.constant 32 : index
    %56 = vector.load %arg9[%c0_135, %c0_136, %c0_137, %c32_138] : memref<1x8x8x72xbf16, #tpu.memory_space<vmem>>, vector<1x8x8x8xbf16>
    tpu.vector_store %arg9[%c0_135, %c0_136, %c0_137, %c32_138], %55 {strides = array<i32>} : memref<1x8x8x72xbf16, #tpu.memory_space<vmem>>, vector<1x8x8x8xbf16>,
    %c0_139 = arith.constant 0 : index
    %c1_140 = arith.constant 1 : index
    %c2_141 = arith.constant 2 : index
    %c0_142 = arith.constant 0 : index
    %57 = vector.load %arg8[%c0_139, %c1_140, %c2_141, %c0_142] : memref<1x10x10x8xbf16, #tpu.memory_space<vmem>>, vector<1x8x8x8xbf16>
    %c0_143 = arith.constant 0 : index
    %c0_144 = arith.constant 0 : index
    %c0_145 = arith.constant 0 : index
    %c40 = arith.constant 40 : index
    %58 = vector.load %arg9[%c0_143, %c0_144, %c0_145, %c40] : memref<1x8x8x72xbf16, #tpu.memory_space<vmem>>, vector<1x8x8x8xbf16>
    tpu.vector_store %arg9[%c0_143, %c0_144, %c0_145, %c40], %57 {strides = array<i32>} : memref<1x8x8x72xbf16, #tpu.memory_space<vmem>>, vector<1x8x8x8xbf16>,
    %c0_146 = arith.constant 0 : index
    %c2_147 = arith.constant 2 : index
    %c0_148 = arith.constant 0 : index
    %c0_149 = arith.constant 0 : index
    %59 = vector.load %arg8[%c0_146, %c2_147, %c0_148, %c0_149] : memref<1x10x10x8xbf16, #tpu.memory_space<vmem>>, vector<1x8x8x8xbf16>
    %c0_150 = arith.constant 0 : index
    %c0_151 = arith.constant 0 : index
    %c0_152 = arith.constant 0 : index
    %c48 = arith.constant 48 : index
    %60 = vector.load %arg9[%c0_150, %c0_151, %c0_152, %c48] : memref<1x8x8x72xbf16, #tpu.memory_space<vmem>>, vector<1x8x8x8xbf16>
    tpu.vector_store %arg9[%c0_150, %c0_151, %c0_152, %c48], %59 {strides = array<i32>} : memref<1x8x8x72xbf16, #tpu.memory_space<vmem>>, vector<1x8x8x8xbf16>,
    %c0_153 = arith.constant 0 : index
    %c2_154 = arith.constant 2 : index
    %c1_155 = arith.constant 1 : index
    %c0_156 = arith.constant 0 : index
    %61 = vector.load %arg8[%c0_153, %c2_154, %c1_155, %c0_156] : memref<1x10x10x8xbf16, #tpu.memory_space<vmem>>, vector<1x8x8x8xbf16>
    %c0_157 = arith.constant 0 : index
    %c0_158 = arith.constant 0 : index
    %c0_159 = arith.constant 0 : index
    %c56 = arith.constant 56 : index
    %62 = vector.load %arg9[%c0_157, %c0_158, %c0_159, %c56] : memref<1x8x8x72xbf16, #tpu.memory_space<vmem>>, vector<1x8x8x8xbf16>
    tpu.vector_store %arg9[%c0_157, %c0_158, %c0_159, %c56], %61 {strides = array<i32>} : memref<1x8x8x72xbf16, #tpu.memory_space<vmem>>, vector<1x8x8x8xbf16>,
    %c0_160 = arith.constant 0 : index
    %c2_161 = arith.constant 2 : index
    %c2_162 = arith.constant 2 : index
    %c0_163 = arith.constant 0 : index
    %63 = vector.load %arg8[%c0_160, %c2_161, %c2_162, %c0_163] : memref<1x10x10x8xbf16, #tpu.memory_space<vmem>>, vector<1x8x8x8xbf16>
    %c0_164 = arith.constant 0 : index
    %c0_165 = arith.constant 0 : index
    %c0_166 = arith.constant 0 : index
    %c64 = arith.constant 64 : index
    %64 = vector.load %arg9[%c0_164, %c0_165, %c0_166, %c64] : memref<1x8x8x72xbf16, #tpu.memory_space<vmem>>, vector<1x8x8x8xbf16>
    tpu.vector_store %arg9[%c0_164, %c0_165, %c0_166, %c64], %63 {strides = array<i32>} : memref<1x8x8x72xbf16, #tpu.memory_space<vmem>>, vector<1x8x8x8xbf16>,
    %c0_167 = arith.constant 0 : index
    %c0_168 = arith.constant 0 : index
    %c0_169 = arith.constant 0 : index
    %c0_170 = arith.constant 0 : index
    %65 = vector.load %arg9[%c0_167, %c0_168, %c0_169, %c0_170] : memref<1x8x8x72xbf16, #tpu.memory_space<vmem>>, vector<1x8x8x72xbf16>
    %66 = vector.shape_cast %65 : vector<1x8x8x72xbf16> to vector<64x72xbf16>
    %c0_171 = arith.constant 0 : index
    %c0_172 = arith.constant 0 : index
    %67 = vector.load %arg4[%c0_171, %c0_172] : memref<72x8xbf16, #tpu.memory_space<vmem>>, vector<72x8xbf16>
    %cst_173 = arith.constant dense<0.000000e+00> : vector<64x8xf32>
    %68 = tpu.matmul %66, %67, %cst_173 {dimension_numbers = #tpu.dot_dimension_numbers<[1], [0], [0], [1], [0, 0, 1, 1], [], []>} : vector<64x72xbf16>, vector<72x8xbf16>, vector<64x8xf32> -> vector<64x8xf32>
    %c0_174 = arith.constant 0 : index
    %c0_175 = arith.constant 0 : index
    %69 = vector.load %arg5[%c0_174, %c0_175] : memref<1x8xf32, #tpu.memory_space<vmem>>, vector<1x8xf32>
    %70 = vector.broadcast %69 : vector<1x8xf32> to vector<64x8xf32>
    %71 = arith.addf %68, %70 : vector<64x8xf32>
    %72 = arith.addf %71, %37 : vector<64x8xf32>
    %cst_176 = arith.constant 0.000000e+00 : f32
    %73 = vector.broadcast %cst_176 : f32 to vector<64x8xf32>
    %74 = arith.maximumf %72, %73 : vector<64x8xf32>
    %75 = vector.shape_cast %74 : vector<64x8xf32> to vector<1x8x8x8xf32>
    %c0_177 = arith.constant 0 : index
    %c0_178 = arith.constant 0 : index
    %c0_179 = arith.constant 0 : index
    %c0_180 = arith.constant 0 : index
    %76 = vector.load %arg6[%c0_177, %c0_178, %c0_179, %c0_180] : memref<1x8x8x8xf32, #tpu.memory_space<vmem>>, vector<1x8x8x8xf32>
    tpu.vector_store %arg6[%c0_177, %c0_178, %c0_179, %c0_180], %75 {strides = array<i32>} : memref<1x8x8x8xf32, #tpu.memory_space<vmem>>, vector<1x8x8x8xf32>,
    return
  }
  func.func @transform_0(%arg0: i32) -> (i32, i32, i32, i32, i32) {
    %c0_i32 = arith.constant 0 : i32
    %c0_i32_0 = arith.constant 0 : i32
    %c0_i32_1 = arith.constant 0 : i32
    %c0_i32_2 = arith.constant 0 : i32
    %c0_i32_3 = arith.constant 0 : i32
    return %arg0, %c0_i32, %c0_i32_0, %c0_i32_1, %c0_i32_2 : i32, i32, i32, i32, i32
  }
  func.func @transform_1(%arg0: i32) -> (i32, i32) {
    %c0_i32 = arith.constant 0 : i32
    %c0_i32_0 = arith.constant 0 : i32
    %c0_i32_1 = arith.constant 0 : i32
    return %c0_i32, %c0_i32_0 : i32, i32
  }
  func.func @transform_2(%arg0: i32) -> (i32, i32) {
    %c0_i32 = arith.constant 0 : i32
    %c0_i32_0 = arith.constant 0 : i32
    %c0_i32_1 = arith.constant 0 : i32
    return %c0_i32, %c0_i32_0 : i32, i32
  }
  func.func @transform_3(%arg0: i32) -> (i32, i32) {
    %c0_i32 = arith.constant 0 : i32
    %c0_i32_0 = arith.constant 0 : i32
    %c0_i32_1 = arith.constant 0 : i32
    return %c0_i32, %c0_i32_0 : i32, i32
  }
  func.func @transform_4(%arg0: i32) -> (i32, i32) {
    %c0_i32 = arith.constant 0 : i32
    %c0_i32_0 = arith.constant 0 : i32
    %c0_i32_1 = arith.constant 0 : i32
    return %c0_i32, %c0_i32_0 : i32, i32
  }
  func.func @transform_5(%arg0: i32) -> (i32, i32, i32, i32) {
    %c0_i32 = arith.constant 0 : i32
    %c0_i32_0 = arith.constant 0 : i32
    %c0_i32_1 = arith.constant 0 : i32
    %c0_i32_2 = arith.constant 0 : i32
    return %arg0, %c0_i32, %c0_i32_0, %c0_i32_1 : i32, i32, i32, i32
  }
}

</mosaic_0001>

<bundles_post_ra>
// kernel: tpu_custom_call.1
= control target key start
LH: loop header
LB: loop body
LE: loop exit
PB: predicated region body
PF: predicated region fallthrough
CT: control target
= control target key end

     0   :  { %10 = vsyncpa [#allocation6], 0  ;;  %s3762_s0 = inlined_call_operand.vmem [shape: bf16[2,4,9,9,4], index: 0, kind: input, shape index: {}]   ;;  %s3763_s1 = inlined_call_operand.vmem [shape: bf16[36,16], index: 1, kind: input, shape index: {}]   ;;  %s3764_s2 = inlined_call_operand.vmem [shape: f32[1,16], index: 2, kind: input, shape index: {}]   ;;  %s3765_s3 = inlined_call_operand.vmem [shape: bf16[72,8], index: 3, kind: input, shape index: {}]   ;;  %s3766_s4 = inlined_call_operand.vmem [shape: f32[1,8], index: 4, kind: input, shape index: {}]   ;;  %s3767_s5 = inlined_call_operand.hbm [shape: f32[2,8,8,8], index: 5, kind: output, shape index: {}]  }
   0x1   :  { %12 = vsyncpa [#allocation6 + $0x1], 0  ;;  %s2904_s18 = smov 0   ;;  %s2906_s19 = smov 0  }
   0x2   :  { %s2908_s20 = smov 0   ;;  %s2910_s21 = smov 0  }
   0x3 LB: > { %s2925_s22 = sadd.s32 4294967295, %s2856_s21   ;;  %s2523_s23 = sadd.s32 4294967294, %s2856_s21   ;;  %s2856_s21 = sphi %s2910_s21, %s3783_s21   ;;  %s2852_s20 = sphi %s2908_s20, %s3782_s20   ;;  %s2848_s19 = sphi %s2906_s19, %s3781_s19   ;;  %s2844_s18 = sphi %s2904_s18, %s3780_s18  }
   0x4   : > { %s2929_s24 = sadd.s32 1, %s2856_s21   ;;  %s135_s25 = sadd.s32 1, %s2852_s20 }
   0x5   : > { %s132_s26 = ssub.s32 %s2856_s21, %s2929_s24  ;;  %p145_p0 = scmp.ne.s32.totalorder %s2852_s20, %s2848_s19 }
   0x6   : > { %p133_p1 = scmp.eq.s32.totalorder %s132_s26, 0  ;;  %p146_p2 = scmp.eq.s32.totalorder %s2925_s22, 1 }
   0x7   : > { %p151_p3 = scmp.ne.s32.totalorder %s2848_s19, %s2844_s18  ;;  %p152_p4 = scmp.eq.s32.totalorder %s2523_s23, 1 }
   0x8   : > { %s2940_s27 = scalar_select %p133_p1, %s2852_s20, %s135_s25  }
   0x9   : > { %p2942_p5 = por %p146_p2, %p145_p0  ;;  %p2946_p6 = por %p152_p4, %p151_p3 }
   0xa   : > { %p2526_p7 = scmp.ge.s32.totalorder %s2856_s21, 1  ;;  %p190_p8 = scmp.lt.s32.totalorder %s2856_s21, 3 }
   0xc   : > { %p191_p9 = pnand %p2526_p7, %p190_p8 }
   0xd   : > { %p218_p10 = scmp.lt.s32.totalorder (!%p191_p9), %s2925_s22, 1  ;;  %s2858_s10 = smov (!%p191_p9), 4   ;;  %vm307_vm0 = vsmask.f32 (!%p191_p9), 3328  ;;  %vm308_vm1 = vsmask.f32 (!%p191_p9), 7440 }
   0xe   : > { %194 = sbr.rel (%p191_p9) target bundleno = 954 (0x3ba), region = 40  ;;  %vm2979_vm2 = vmor (!%p191_p9), %vm307_vm0, %vm308_vm1  ;;  %s2859_s11 = smov (!%p191_p9), 12   ;;  %vm232_vm3 = vcmask (!%p191_p9), 27648   ;;  %vm1045_vm4 = vcmask (!%p191_p9), 1041408   ;;  %vm282_vm5 = vcmask (!%p191_p9), 60448   ;;  %vm446_vm6 = vcmask (!%p191_p9), 93248  }
   0xf   : > { %s2860_s12 = smov (!%p191_p9), 8   ;;  %s2861_s13 = smov (!%p191_p9), 16   ;;  %vm496_vm7 = vcmask (!%p191_p9), 126048   ;;  %vm546_vm8 = vcmask (!%p191_p9), 158848   ;;  %vm707_vm9 = vcmask (!%p191_p9), 191648   ;;  %vm757_vm10 = vcmask (!%p191_p9), 224448  }
  0x10   : > { %s2862_s14 = smov (!%p191_p9), 20   ;;  %s2863_s15 = smov (!%p191_p9), 24   ;;  %vm807_vm11 = vcmask (!%p191_p9), 257248   ;;  %vm968_vm12 = vcmask (!%p191_p9), 290048   ;;  %vm1032_vm13 = vcmask (!%p191_p9), 293888   ;;  %vm1122_vm14 = vcmask (!%p191_p9), 60416  }
  0x11   : > { %s2864_s23 = smov (!%p191_p9), 28   ;;  %vm1124_vm15 = vcmask (!%p191_p9), 57344   ;;  %vm1131_vm0 = vsmask.f32 (!%p191_p9), 256  ;;  %vm1157_vm1 = vsmask.f32 (!%p191_p9), 7938 }
  0x12   : > { %s2867_s8 = smov (!%p191_p9), 48   ;;  %s2870_s16 = smov (!%p191_p9), 64  }
  0x13   : > { %s2672_s17 = sshll.u32 (!%p191_p9), %s2925_s22, 10  ;;  %s2872_s7 = smov (!%p191_p9), [#allocation5]  }
  0x15   : > { %s219_s30 = scalar_select %p218_p10, %s2925_s22, 1 }
  0x17   : > { %s2723_s6 = smul.u32 288, %s219_s30  ;;  %s2865_s30 = smov 32  }
  0x19   : > { %s2957_s9 = scalar_lea.vmem %s3762_s0, %s2723_s6  ;;  %s3708_s6 = scalar_lea.hbm %s3767_s5, %s2672_s17 }
  0x1a   : > { %v2531_v0 = vld [vmem:[%s2957_s9 + $0x58] sm:$0xf]  ;;  %v2529_v1 = vld [vmem:[%s2957_s9 + $0x48] sm:$0xf]  ;;  %v2532_v2 = vld [vmem:[%s2957_s9 + $0x60] sm:$0xf] }
  0x1b   : > { %262 = vrot.lane.b32.xlu1 %v2531_v0, %s2858_s10  ;;  %258 = vrot.lane.b32.xlu0 %v2529_v1, %s2858_s10  ;;  %v2530_v3 = vld [vmem:[%s2957_s9 + $0x50] sm:$0xf]  ;;  %v293_v4 = vld [vmem:[%s2957_s9 + $0x8] sm:$0xf] }
  0x1c   : > { %v294_v5 = vld [vmem:[%s2957_s9 + $0xc] sm:$0x1]  ;;  %v325_v6 = vshrl.u32 %v293_v4, 16  ;;  %v328_v7 = vshll.u32 %v293_v4, 16  ;;  %v291_v9 = vld [vmem:[%s2957_s9] sm:$0xf] }
  0x1d   : > { %v334_v8 = vshll.u32 %v294_v5, 16  ;;  %v2538_v10 = vld [vmem:[%s2957_s9 + $0x98] sm:$0xf]  ;;  %v2537_v11 = vld [vmem:[%s2957_s9 + $0x90] sm:$0xf]  ;;  %v311_v13 = vshrl.u32 %v291_v9, 16 }
  0x1e   : > { %v292_v12 = vld [vmem:[%s2957_s9 + $0x4] sm:$0x1]  ;;  %v314_v14 = vshll.u32 %v291_v9, 16  ;;  %v297_v15 = vld [vmem:[%s2957_s9 + $0x18] sm:$0xf]  ;;  %v327_v16 = vrot.slane %v325_v6, 4 }
  0x1f   : > { %264 = vrot.lane.b32.xlu1 %v2532_v2, %s2858_s10  ;;  %260 = vrot.lane.b32.xlu0 %v2530_v3, %s2858_s10  ;;  %v330_v17 = vrot.slane %v328_v7, 5  ;;  %v336_v18 = vrot.slane %v334_v8, 5  ;;  %v320_v19 = vshll.u32 %v292_v12, 16  ;;  %v298_v20 = vld [vmem:[%s2957_s9 + $0x1c] sm:$0x1]  ;;  %v313_v21 = vrot.slane %v311_v13, 4 }
  0x20   : > { %v316_v22 = vrot.slane %v314_v14, 5  ;;  %v353_v23 = vshrl.u32 %v297_v15, 16  ;;  %v356_v24 = vshll.u32 %v297_v15, 16  ;;  %v295_v25 = vld [vmem:[%s2957_s9 + $0x10] sm:$0xf]  ;;  %v362_v28 = vshll.u32 %v298_v20, 16 }
  0x21   : > { %v331_v26 = vor.u32 %v330_v17, %v327_v16  ;;  %v322_v27 = vrot.slane %v320_v19, 5  ;;  %v296_v29 = vld [vmem:[%s2957_s9 + $0x14] sm:$0x1]  ;;  %v339_v30 = vshrl.u32 %v295_v25, 16  ;;  %v342_v35 = vshll.u32 %v295_v25, 16 }
  0x22   : > { %v317_v32 = vor.u32 %v316_v22, %v313_v21  ;;  %v355_v33 = vrot.slane %v353_v23, 4  ;;  %v358_v34 = vrot.slane %v356_v24, 5  ;;  %v348_v38 = vshll.u32 %v296_v29, 16  ;;  %v2555_v48 = vld [vmem:[%s2957_s9 + $0x98] sm:$0xf] }
  0x23   : > { %474 = vrot.lane.b32.xlu1 %v2538_v10, %s2859_s11  ;;  %472 = vrot.lane.b32.xlu0 %v2537_v11, %s2859_s11  ;;  %v332_v36 = vrot.slane %v331_v26, 4  ;;  %v341_v37 = vrot.slane %v339_v30, 4  ;;  %v364_v41 = vrot.slane %v362_v28, 5  ;;  %v344_v42 = vrot.slane %v342_v35, 5  ;;  %v2553_v51 = vld [vmem:[%s2957_s9 + $0x90] sm:$0xf] }
  0x24   : > { %v318_v39 = vrot.slane %v317_v32, 4  ;;  %v359_v40 = vor.u32 %v358_v34, %v355_v33  ;;  %v350_v47 = vrot.slane %v348_v38, 5  ;;  %v586_v49 = vshrl.u32 %v2555_v48, 16  ;;  %v2559_v56 = vld [vmem:[%s2957_s9 + $0xa8] sm:$0xf] }
  0x25   : > { %v337_v43 = vsel %vm2979_vm2, %v332_v36, %v336_v18  ;;  %v345_v46 = vor.u32 %v344_v42, %v341_v37  ;;  %v589_v50 = vshll.u32 %v2555_v48, 16  ;;  %v572_v54 = vshrl.u32 %v2553_v51, 16  ;;  %v2540_v58 = vld [vmem:[%s2957_s9 + $0xa8] sm:$0xf]  ;;  %v2539_v59 = vld [vmem:[%s2957_s9 + $0xa0] sm:$0xf] }
  0x26   : > { %v323_v44 = vsel %vm2979_vm2, %v318_v39, %v322_v27  ;;  %v360_v45 = vrot.slane %v359_v40, 4  ;;  %v575_v55 = vshll.u32 %v2553_v51, 16  ;;  %v2556_v60 = vld [vmem:[%s2957_s9 + $0x9c] sm:$0x1]  ;;  %v588_v61 = vrot.slane %v586_v49, 4 }
  0x27   : > { %424 = vrot.lane.b32.xlu1 %v337_v43, %s2860_s12  ;;  %422 = vrot.lane.b32.xlu0 %v323_v44, %s2860_s12  ;;  %v346_v53 = vrot.slane %v345_v46, 4  ;;  %v591_v62 = vrot.slane %v589_v50, 5  ;;  %v574_v63 = vrot.slane %v572_v54, 4  ;;  %v2557_v1 = vld [vmem:[%s2957_s9 + $0xa0] sm:$0xf]  ;;  %v614_v3 = vshrl.u32 %v2559_v56, 16 }
  0x28   : > { %v365_v52 = vsel %vm2979_vm2, %v360_v45, %v364_v41  ;;  %v577_v0 = vrot.slane %v575_v55, 5  ;;  %v2554_v2 = vld [vmem:[%s2957_s9 + $0x94] sm:$0x1]  ;;  %v617_v4 = vshll.u32 %v2559_v56, 16  ;;  %v600_v5 = vshrl.u32 %v2557_v1, 16 }
  0x29   : > { %v351_v57 = vsel %vm2979_vm2, %v346_v53, %v350_v47  ;;  %v603_v6 = vshll.u32 %v2557_v1, 16  ;;  %v2546_v7 = vld [vmem:[%s2957_s9 + $0xe0] sm:$0xf]  ;;  %v2545_v8 = vld [vmem:[%s2957_s9 + $0xd8] sm:$0xf]  ;;  %v592_v9 = vor.u32 %v591_v62, %v588_v61  ;;  %v595_v10 = vshll.u32 %v2556_v60, 16 }
  0x2a   : > { %v578_v11 = vor.u32 %v577_v0, %v574_v63  ;;  %v581_v12 = vshll.u32 %v2554_v2, 16  ;;  %v2560_v13 = vld [vmem:[%s2957_s9 + $0xac] sm:$0x1]  ;;  %v616_v14 = vrot.slane %v614_v3, 4  ;;  %v619_v15 = vrot.slane %v617_v4, 5 }
  0x2b   : > { %428 = vrot.lane.b32.xlu1 %v365_v52, %s2860_s12  ;;  %426 = vrot.lane.b32.xlu0 %v351_v57, %s2860_s12  ;;  %v602_v16 = vrot.slane %v600_v5, 4  ;;  %v605_v17 = vrot.slane %v603_v6, 5  ;;  %v2558_v18 = vld [vmem:[%s2957_s9 + $0xa4] sm:$0x1]  ;;  %v593_v19 = vrot.slane %v592_v9, 4  ;;  %v597_v20 = vrot.slane %v595_v10, 5 }
  0x2c   : > { %v583_v21 = vrot.slane %v581_v12, 5  ;;  %v623_v22 = vshll.u32 %v2560_v13, 16  ;;  %v2548_v23 = vld [vmem:[%s2957_s9 + $0xf0] sm:$0xf]  ;;  %v2547_v24 = vld [vmem:[%s2957_s9 + $0xe8] sm:$0xf]  ;;  %v620_v26 = vor.u32 %v619_v15, %v616_v14 }
  0x2d   : > { %v579_v25 = vrot.slane %v578_v11, 4  ;;  %v606_v27 = vor.u32 %v605_v17, %v602_v16  ;;  %v609_v28 = vshll.u32 %v2558_v18, 16  ;;  %v598_v29 = vsel %vm2979_vm2, %v593_v19, %v597_v20  ;;  %v2587_v38 = vld [vmem:[%s2957_s9 + $0x10] sm:$0xf]  ;;  %v2585_v39 = vld [vmem:[%s2957_s9 + $0x8] sm:$0xf] }
  0x2e   : > { %v625_v30 = vrot.slane %v623_v22, 5  ;;  %v621_v33 = vrot.slane %v620_v26, 4  ;;  %v847_v40 = vshrl.u32 %v2587_v38, 16  ;;  %v850_v41 = vshll.u32 %v2587_v38, 16  ;;  %v2570_v42 = vld [vmem:[%s2957_s9 + $0x10] sm:$0xf] }
  0x2f   : > { %478 = vrot.lane.b32.xlu1 %v2540_v58, %s2859_s11  ;;  %476 = vrot.lane.b32.xlu0 %v2539_v59, %s2859_s11  ;;  %v584_v32 = vsel %vm2979_vm2, %v579_v25, %v583_v21  ;;  %v607_v34 = vrot.slane %v606_v27, 4  ;;  %v611_v35 = vrot.slane %v609_v28, 5  ;;  %v2569_v43 = vld [vmem:[%s2957_s9 + $0x8] sm:$0xf]  ;;  %v833_v44 = vshrl.u32 %v2585_v39, 16  ;;  %v2778_v9 = vld [vmem:[%s3763_s1] sm:$0xff]  }
  0x30   : > { %v626_v36 = vsel %vm2979_vm2, %v621_v33, %v625_v30  ;;  %v836_v45 = vshll.u32 %v2585_v39, 16  ;;  %v2572_v46 = vld [vmem:[%s2957_s9 + $0x20] sm:$0xf]  ;;  %v2571_v47 = vld [vmem:[%s2957_s9 + $0x18] sm:$0xf]  ;;  %v849_v48 = vrot.slane %v847_v40, 4  ;;  %2689 = vmatprep.subr.bf16.mxu0 %v2778_v9 }
  0x31   : > { %v612_v37 = vsel %vm2979_vm2, %v607_v34, %v611_v35  ;;  %v852_v49 = vrot.slane %v850_v41, 5  ;;  %v2591_v50 = vld [vmem:[%s2957_s9 + $0x20] sm:$0xf]  ;;  %v2589_v51 = vld [vmem:[%s2957_s9 + $0x18] sm:$0xf]  ;;  %v835_v54 = vrot.slane %v833_v44, 4  ;;  %2690 = vmatpush3.bf16.msra.mxu0 %v2778_v9 }
  0x32   : > { %v2588_v52 = vld [vmem:[%s2957_s9 + $0x14] sm:$0x1]  ;;  %v2586_v53 = vld [vmem:[%s2957_s9 + $0xc] sm:$0x1]  ;;  %v838_v55 = vrot.slane %v836_v45, 5  ;;  %v875_v56 = vshrl.u32 %v2591_v50, 16 }
  0x33   : > { %524 = vrot.lane.b32.xlu1 %v2546_v7, %s2861_s13  ;;  %522 = vrot.lane.b32.xlu0 %v2545_v8, %s2861_s13  ;;  %v878_v57 = vshll.u32 %v2591_v50, 16  ;;  %v861_v58 = vshrl.u32 %v2589_v51, 16  ;;  %v864_v59 = vshll.u32 %v2589_v51, 16  ;;  %v853_v60 = vor.u32 %v852_v49, %v849_v48  ;;  %v2578_v63 = vld [vmem:[%s2957_s9 + $0x58] sm:$0xf]  ;;  %v2779_v19 = vld [vmem:[%s3763_s1 + $0x8] sm:$0xff]  }
  0x34   : > { %v856_v61 = vshll.u32 %v2588_v52, 16  ;;  %v842_v62 = vshll.u32 %v2586_v53, 16  ;;  %v2577_v0 = vld [vmem:[%s2957_s9 + $0x50] sm:$0xf]  ;;  %v839_v1 = vor.u32 %v838_v55, %v835_v54  ;;  %v2592_v2 = vld [vmem:[%s2957_s9 + $0x24] sm:$0x1]  ;;  %2691 = vmatprep.subr.bf16.mxu0 %v2779_v19 }
  0x35   : > { %v2590_v3 = vld [vmem:[%s2957_s9 + $0x1c] sm:$0x1]  ;;  %v2580_v4 = vld [vmem:[%s2957_s9 + $0x68] sm:$0xf]  ;;  %v877_v5 = vrot.slane %v875_v56, 4  ;;  %v880_v6 = vrot.slane %v878_v57, 5  ;;  %2692 = vmatpush3.bf16.msra.mxu0 %v2779_v19 }
  0x36   : > { %v863_v7 = vrot.slane %v861_v58, 4  ;;  %v866_v8 = vrot.slane %v864_v59, 5  ;;  %v2579_v10 = vld [vmem:[%s2957_s9 + $0x60] sm:$0xf]  ;;  %v854_v11 = vrot.slane %v853_v60, 4  ;;  %v858_v12 = vrot.slane %v856_v61, 5 }
  0x37   : > { %528 = vrot.lane.b32.xlu1 %v2548_v23, %s2861_s13  ;;  %526 = vrot.lane.b32.xlu0 %v2547_v24, %s2861_s13  ;;  %v844_v13 = vrot.slane %v842_v62, 5  ;;  %v884_v14 = vshll.u32 %v2592_v2, 16  ;;  %v840_v15 = vrot.slane %v839_v1, 4  ;;  %v870_v16 = vshll.u32 %v2590_v3, 16  ;;  %v301_v17 = vld [vmem:[%s2957_s9 + $0x28] sm:$0xf] }
  0x38   : > { %v299_v18 = vld [vmem:[%s2957_s9 + $0x20] sm:$0xf]  ;;  %v881_v20 = vor.u32 %v880_v6, %v877_v5  ;;  %v867_v21 = vor.u32 %v866_v8, %v863_v7  ;;  %v381_v22 = vshrl.u32 %v301_v17, 16  ;;  %v384_v23 = vshll.u32 %v301_v17, 16  ;;  %v226_v30 = vld [vmem:[%s2957_s9 + $0x10] sm:$0xf] }
  0x39   : > { %v367_v24 = vshrl.u32 %v299_v18, 16  ;;  %v370_v25 = vshll.u32 %v299_v18, 16  ;;  %v859_v26 = vsel %vm2979_vm2, %v854_v11, %v858_v12  ;;  %v845_v27 = vsel %vm2979_vm2, %v840_v15, %v844_v13  ;;  %v303_v33 = vld [vmem:[%s2957_s9 + $0x30] sm:$0xf]  ;;  %235 = vst.msk [vmem:[#allocation2 + $0x8] sm:$0xf] %vm232_vm3, %v226_v30 }
  0x3a   : > { %v886_v28 = vrot.slane %v884_v14, 5  ;;  %v224_v34 = vld [vmem:[%s2957_s9] sm:$0xf]  ;;  %v2534_v35 = vld [vmem:[%s2957_s9 + $0x70] sm:$0xf]  ;;  %v868_v38 = vrot.slane %v867_v21, 4 }
  0x3b   : > { %685 = vrot.lane.b32.xlu1 %v598_v29, %s2862_s14  ;;  %683 = vrot.lane.b32.xlu0 %v584_v32, %s2862_s14  ;;  %v872_v29 = vrot.slane %v870_v16, 5  ;;  %v305_v32 = vld [vmem:[%s2957_s9 + $0x38] sm:$0xf]  ;;  %v302_v39 = vld [vmem:[%s2957_s9 + $0x2c] sm:$0x1]  ;;  %v383_v41 = vrot.slane %v381_v22, 4 }
  0x3c   : > { %233 = vst.msk [vmem:[#allocation2] sm:$0xf] %vm232_vm3, %v224_v34  ;;  %v227_v40 = vld [vmem:[%s2957_s9 + $0x18] sm:$0xf]  ;;  %v372_v44 = vrot.slane %v370_v25, 5  ;;  %v412_v48 = vshll.u32 %v305_v32, 16 }
  0x3d   : > { %236 = vst.msk [vmem:[#allocation2 + $0xc] sm:$0xf] %vm232_vm3, %v227_v40  ;;  %v225_v45 = vld [vmem:[%s2957_s9 + $0x8] sm:$0xf]  ;;  %v395_v49 = vshrl.u32 %v303_v33, 16  ;;  %v398_v50 = vshll.u32 %v303_v33, 16  ;;  %v873_v53 = vsel %vm2979_vm2, %v868_v38, %v872_v29 }
  0x3e   : > { %234 = vst.msk [vmem:[#allocation2 + $0x4] sm:$0xf] %vm232_vm3, %v225_v45  ;;  %v390_v52 = vshll.u32 %v302_v39, 16  ;;  %v306_v57 = vld [vmem:[%s2957_s9 + $0x3c] sm:$0x1]  ;;  %v414_v59 = vrot.slane %v412_v48, 5 }
  0x3f   : > { %689 = vrot.lane.b32.xlu1 %v626_v36, %s2862_s14  ;;  %687 = vrot.lane.b32.xlu0 %v612_v37, %s2862_s14  ;;  %v2533_v36 = vld [vmem:[%s2957_s9 + $0x68] sm:$0xf]  ;;  %v882_v37 = vrot.slane %v881_v20, 4  ;;  %v397_v60 = vrot.slane %v395_v49, 4  ;;  %v400_v61 = vrot.slane %v398_v50, 5  ;;  %v418_v6 = vshll.u32 %v306_v57, 16 }
  0x40   : > { %v304_v62 = vld [vmem:[%s2957_s9 + $0x34] sm:$0x1]  ;;  %v392_v1 = vrot.slane %v390_v52, 5  ;;  %v229_v2 = vld [vmem:[%s2957_s9 + $0x28] sm:$0xf] }
  0x41   : > { %v887_v51 = vsel %vm2979_vm2, %v882_v37, %v886_v28  ;;  %238 = vst.msk [vmem:[#allocation2 + $0x14] sm:$0xf] %vm232_vm3, %v229_v2  ;;  %v228_v7 = vld [vmem:[%s2957_s9 + $0x20] sm:$0xf]  ;;  %v401_v9 = vor.u32 %v400_v61, %v397_v60  ;;  %v231_v11 = vld [vmem:[%s2957_s9 + $0x38] sm:$0xf] }
  0x42   : > { %237 = vst.msk [vmem:[#allocation2 + $0x10] sm:$0xf] %vm232_vm3, %v228_v7  ;;  %v230_v12 = vld [vmem:[%s2957_s9 + $0x30] sm:$0xf]  ;;  %240 = vst.msk [vmem:[#allocation2 + $0x1c] sm:$0xf] %vm232_vm3, %v231_v11 }
  0x43   : > { %735 = vrot.lane.b32.xlu1 %v2570_v42, %s2863_s15  ;;  %733 = vrot.lane.b32.xlu0 %v2569_v43, %s2863_s15  ;;  %v386_v42 = vrot.slane %v384_v23, 5  ;;  %v369_v43 = vrot.slane %v367_v24, 4  ;;  %239 = vst.msk [vmem:[#allocation2 + $0x18] sm:$0xf] %vm232_vm3, %v230_v12  ;;  %v420_v15 = vrot.slane %v418_v6, 5  ;;  %v402_v19 = vrot.slane %v401_v9, 4  ;;  %vm3260_vm3 = vmand %vm1124_vm15, %vm1131_vm0 }
  0x44   : > { %v2781_v13 = vld [vmem:[%s3763_s1 + $0x10] ss:$0 sps:$4 sm:$0x33]   ;;  %v2563_v23 = vld [vmem:[%s2957_s9 + $0xb8] sm:$0xf]  ;;  %vm2228_vm0 = vcmask 585216  }
  0x45   : > { %v387_v54 = vor.u32 %v386_v42, %v383_v41  ;;  %v373_v55 = vor.u32 %v372_v44, %v369_v43  ;;  %v1047_v16 = vsel %vm1045_vm4, %v2781_v13, 0  ;;  %2721 = vmatprep.subr.msk.bf16.mxu0 %vm1045_vm4, %v2781_v13  ;;  %v2561_v24 = vld [vmem:[%s2957_s9 + $0xb0] sm:$0xf]  ;;  %v2542_v25 = vld [vmem:[%s2957_s9 + $0xb8] sm:$0xf]  ;;  %vm3267_vm4 = vmand %vm1124_vm15, %vm1157_vm1 }
  0x46   : > { %2694 = vmatpush3.bf16.msra.mxu0 %v1047_v16  ;;  %v628_v28 = vshrl.u32 %v2561_v24, 16  ;;  %v2541_v29 = vld [vmem:[%s2957_s9 + $0xb0] sm:$0xf]  ;;  %v631_v30 = vshll.u32 %v2561_v24, 16  ;;  %v2565_v33 = vld [vmem:[%s2957_s9 + $0xc0] sm:$0xf] }
  0x47   : > { %739 = vrot.lane.b32.xlu1 %v2572_v46, %s2863_s15  ;;  %737 = vrot.lane.b32.xlu0 %v2571_v47, %s2863_s15  ;;  %v300_v46 = vld [vmem:[%s2957_s9 + $0x24] sm:$0x1]  ;;  %v409_v47 = vshrl.u32 %v305_v32, 16  ;;  %v388_v3 = vrot.slane %v387_v54, 4  ;;  %v2567_v32 = vld [vmem:[%s2957_s9 + $0xc8] sm:$0xf] }
  0x48   : > { %v376_v56 = vshll.u32 %v300_v46, 16  ;;  %v2544_v34 = vld [vmem:[%s2957_s9 + $0xc8] sm:$0xf]  ;;  %v630_v39 = vrot.slane %v628_v28, 4  ;;  %v670_v40 = vshrl.u32 %v2567_v32, 16  ;;  %v633_v42 = vrot.slane %v631_v30, 5 }
  0x49   : > { %v411_v58 = vrot.slane %v409_v47, 4  ;;  %v393_v14 = vsel %vm2979_vm2, %v388_v3, %v392_v1  ;;  %v2562_v41 = vld [vmem:[%s2957_s9 + $0xb4] sm:$0x1]  ;;  %v673_v43 = vshll.u32 %v2567_v32, 16  ;;  %v656_v44 = vshrl.u32 %v2565_v33, 16 }
  0x4a   : > { %v378_v5 = vrot.slane %v376_v56, 5  ;;  %v659_v45 = vshll.u32 %v2565_v33, 16  ;;  %v2550_v46 = vld [vmem:[%s2957_s9 + $0x100] sm:$0xf]  ;;  %v2549_v47 = vld [vmem:[%s2957_s9 + $0xf8] sm:$0xf]  ;;  %v634_v52 = vor.u32 %v633_v42, %v630_v39 }
  0x4b   : > { %785 = vrot.lane.b32.xlu1 %v2578_v63, %s2864_s23  ;;  %783 = vrot.lane.b32.xlu0 %v2577_v0, %s2864_s23  ;;  %v2536_v63 = vld [vmem:[%s2957_s9 + $0x80] sm:$0xf]  ;;  %v2535_v0 = vld [vmem:[%s2957_s9 + $0x78] sm:$0xf]  ;;  %v415_v8 = vor.u32 %v414_v59, %v411_v58  ;;  %v637_v50 = vshll.u32 %v2562_v41, 16  ;;  %v675_v54 = vrot.slane %v673_v43, 5 }
  0x4c   : > { %v661_v56 = vrot.slane %v659_v45, 5  ;;  %v2566_v57 = vld [vmem:[%s2957_s9 + $0xc4] sm:$0x1]  ;;  %v2595_v12 = vld [vmem:[%s2957_s9 + $0x30] sm:$0xf] }
  0x4d   : > { %v416_v18 = vrot.slane %v415_v8, 4  ;;  %v639_v60 = vrot.slane %v637_v50, 5  ;;  %v665_v3 = vshll.u32 %v2566_v57, 16  ;;  %v2593_v13 = vld [vmem:[%s2957_s9 + $0x28] sm:$0xf] }
  0x4e   : > { %v889_v16 = vshrl.u32 %v2593_v13, 16  ;;  %v2596_v24 = vld [vmem:[%s2957_s9 + $0x34] sm:$0x1]  ;;  %v2600_v41 = vld [vmem:[%s2957_s9 + $0x44] sm:$0x1] }
  0x4f   : > { %789 = vrot.lane.b32.xlu1 %v2580_v4, %s2864_s23  ;;  %787 = vrot.lane.b32.xlu0 %v2579_v10, %s2864_s23  ;;  %v374_v4 = vrot.slane %v373_v55, 4  ;;  %v404_v10 = vshll.u32 %v304_v62, 16  ;;  %v421_v21 = vsel %vm2979_vm2, %v416_v18, %v420_v15  ;;  %v658_v55 = vrot.slane %v656_v44, 4  ;;  %v2552_v62 = vld [vmem:[%s2957_s9 + $0x110] sm:$0xf] }
  0x50   : > { %v667_v9 = vrot.slane %v665_v3, 5  ;;  %v906_v15 = vshll.u32 %v2595_v12, 16  ;;  %v2574_v18 = vld [vmem:[%s2957_s9 + $0x30] sm:$0xf]  ;;  %v940_v50 = vshll.u32 %v2600_v41, 16 }
  0x51   : > { %v379_v17 = vsel %vm2979_vm2, %v374_v4, %v378_v5  ;;  %v406_v20 = vrot.slane %v404_v10, 5  ;;  %v662_v2 = vor.u32 %v661_v56, %v658_v55 }
  0x53   : > { %946 = vrot.lane.b32.xlu1 %v859_v26, %s2865_s30  ;;  %944 = vrot.lane.b32.xlu0 %v845_v27, %s2865_s30  ;;  %v407_v22 = vsel %vm2979_vm2, %v402_v19, %v406_v20  ;;  %v642_v26 = vshrl.u32 %v2563_v23, 16  ;;  %v645_v27 = vshll.u32 %v2563_v23, 16  ;;  %v663_v8 = vrot.slane %v662_v2, 4  ;;  %v2573_v19 = vld [vmem:[%s2957_s9 + $0x28] sm:$0xf] }
  0x54   : > { %v2599_v20 = vld [vmem:[%s2957_s9 + $0x40] sm:$0xf]  ;;  %v2575_v23 = vld [vmem:[%s2957_s9 + $0x38] sm:$0xf] }
  0x55   : > { %v644_v37 = vrot.slane %v642_v26, 4  ;;  %v647_v38 = vrot.slane %v645_v27, 5  ;;  %v668_v11 = vsel %vm2979_vm2, %v663_v8, %v667_v9  ;;  %v908_v26 = vrot.slane %v906_v15, 5 }
  0x56   : > { %v891_v27 = vrot.slane %v889_v16, 4  ;;  %v931_v30 = vshrl.u32 %v2599_v20, 16  ;;  %v934_v32 = vshll.u32 %v2599_v20, 16 }
  0x57   : > { %268 = vrot.lane.b32.xlu1 %v2534_v35, %s2858_s10  ;;  %266 = vrot.lane.b32.xlu0 %v2533_v36, %s2858_s10  ;;  %v2543_v35 = vld [vmem:[%s2957_s9 + $0xc0] sm:$0xf]  ;;  %v2564_v36 = vld [vmem:[%s2957_s9 + $0xbc] sm:$0x1]  ;;  %v648_v48 = vor.u32 %v647_v38, %v644_v37  ;;  %v912_v38 = vshll.u32 %v2596_v24, 16 }
  0x58   : > { %v651_v49 = vshll.u32 %v2564_v36, 16  ;;  %v2581_v36 = vld [vmem:[%s2957_s9 + $0x70] sm:$0xf]  ;;  %v933_v42 = vrot.slane %v931_v30, 4  ;;  %v936_v43 = vrot.slane %v934_v32, 5 }
  0x59   : > { %v649_v58 = vrot.slane %v648_v48, 4  ;;  %v914_v48 = vrot.slane %v912_v38, 5 }
  0x5a   : > { %v653_v59 = vrot.slane %v651_v49, 5 }
  0x5b   : > { %950 = vrot.lane.b32.xlu1 %v887_v51, %s2865_s30  ;;  %948 = vrot.lane.b32.xlu0 %v873_v53, %s2865_s30  ;;  %v672_v51 = vrot.slane %v670_v40, 4  ;;  %v2568_v53 = vld [vmem:[%s2957_s9 + $0xcc] sm:$0x1] }
  0x5c   : > { %v679_v61 = vshll.u32 %v2568_v53, 16  ;;  %v654_v4 = vsel %vm2979_vm2, %v649_v58, %v653_v59 }
  0x5d   : > { %v676_v1 = vor.u32 %v675_v54, %v672_v51  ;;  %v2584_v51 = vld [vmem:[%s2957_s9 + $0x88] sm:$0xf]  ;;  %v937_v54 = vor.u32 %v936_v43, %v933_v42 }
  0x5e   : > { %v681_v5 = vrot.slane %v679_v61, 5 }
  0x5f   : > { %272 = vrot.lane.b32.xlu1 %v2536_v63, %s2858_s10  ;;  %270 = vrot.lane.b32.xlu0 %v2535_v0, %s2858_s10  ;;  %v2551_v63 = vld [vmem:[%s2957_s9 + $0x108] sm:$0xf]  ;;  %v635_v0 = vrot.slane %v634_v52, 4  ;;  %v677_v7 = vrot.slane %v676_v1, 4  ;;  %v2583_v52 = vld [vmem:[%s2957_s9 + $0x80] sm:$0xf] }
  0x61   : > { %v640_v6 = vsel %vm2979_vm2, %v635_v0, %v639_v60  ;;  %v682_v10 = vsel %vm2979_vm2, %v677_v7, %v681_v5  ;;  %v942_v60 = vrot.slane %v940_v50, 5 }
  0x63   : > { %432 = vrot.lane.b32.xlu1 %v393_v14, %s2860_s12  ;;  %430 = vrot.lane.b32.xlu0 %v379_v17, %s2860_s12  ;;  %v903_v14 = vshrl.u32 %v2595_v12, 16  ;;  %v892_v17 = vshll.u32 %v2593_v13, 16 }
  0x65   : > { %v894_v28 = vrot.slane %v892_v17, 5 }
  0x67   : > { %436 = vrot.lane.b32.xlu1 %v421_v21, %s2860_s12  ;;  %434 = vrot.lane.b32.xlu0 %v407_v22, %s2860_s12  ;;  %v2597_v21 = vld [vmem:[%s2957_s9 + $0x38] sm:$0xf]  ;;  %v2576_v22 = vld [vmem:[%s2957_s9 + $0x40] sm:$0xf]  ;;  %v895_v39 = vor.u32 %v894_v28, %v891_v27 }
  0x68   : > { %v917_v33 = vshrl.u32 %v2597_v21, 16 }
  0x69   : > { %v896_v53 = vrot.slane %v895_v39, 4 }
  0x6a   : > { %v919_v44 = vrot.slane %v917_v33, 4 }
  0x6b   : > { %482 = vrot.lane.b32.xlu1 %v2542_v25, %s2859_s11  ;;  %480 = vrot.lane.b32.xlu0 %v2541_v29, %s2859_s11  ;;  %v905_v25 = vrot.slane %v903_v14, 4  ;;  %v2594_v29 = vld [vmem:[%s2957_s9 + $0x2c] sm:$0x1] }
  0x6c   : > { %v898_v40 = vshll.u32 %v2594_v29, 16 }
  0x6d   : > { %v909_v37 = vor.u32 %v908_v26, %v905_v25 }
  0x6e   : > { %v900_v49 = vrot.slane %v898_v40, 5 }
  0x6f   : > { %486 = vrot.lane.b32.xlu1 %v2544_v34, %s2859_s11  ;;  %484 = vrot.lane.b32.xlu0 %v2543_v35, %s2859_s11  ;;  %v920_v34 = vshll.u32 %v2597_v21, 16  ;;  %v2582_v35 = vld [vmem:[%s2957_s9 + $0x78] sm:$0xf] }
  0x70   : > { %v901_v61 = vsel %vm2979_vm2, %v896_v53, %v900_v49 }
  0x71   : > { %v922_v45 = vrot.slane %v920_v34, 5 }
  0x73   : > { %532 = vrot.lane.b32.xlu1 %v2550_v46, %s2861_s13  ;;  %530 = vrot.lane.b32.xlu0 %v2549_v47, %s2861_s13  ;;  %v2598_v46 = vld [vmem:[%s2957_s9 + $0x3c] sm:$0x1]  ;;  %v910_v47 = vrot.slane %v909_v37, 4  ;;  %v923_v55 = vor.u32 %v922_v45, %v919_v44  ;;  %s2868_s9 = smov 56  }
  0x74   : > { %v926_v56 = vshll.u32 %v2598_v46, 16 }
  0x75   : > { %v915_v59 = vsel %vm2979_vm2, %v910_v47, %v914_v48 }
  0x76   : > { %v928_v0 = vrot.slane %v926_v56, 5 }
  0x77   : > { %536 = vrot.lane.b32.xlu1 %v2552_v62, %s2861_s13  ;;  %534 = vrot.lane.b32.xlu0 %v2551_v63, %s2861_s13  ;;  %v938_v62 = vrot.slane %v937_v54, 4  ;;  %v924_v63 = vrot.slane %v923_v55, 4 }
  0x79   : > { %v943_v3 = vsel %vm2979_vm2, %v938_v62, %v942_v60 }
  0x7b   : > { %693 = vrot.lane.b32.xlu1 %v654_v4, %s2862_s14  ;;  %691 = vrot.lane.b32.xlu0 %v640_v6, %s2862_s14  ;;  %v929_v4 = vsel %vm2979_vm2, %v924_v63, %v928_v0 }
  0x7f   : > { %697 = vrot.lane.b32.xlu1 %v682_v10, %s2862_s14  ;;  %695 = vrot.lane.b32.xlu0 %v668_v11, %s2862_s14  ;;  %s2869_s14 = smov 40  }
  0x83   : > { %743 = vrot.lane.b32.xlu1 %v2574_v18, %s2863_s15  ;;  %741 = vrot.lane.b32.xlu0 %v2573_v19, %s2863_s15 }
  0x87   : > { %747 = vrot.lane.b32.xlu1 %v2576_v22, %s2863_s15  ;;  %745 = vrot.lane.b32.xlu0 %v2575_v23, %s2863_s15 }
  0x8b   : > { %793 = vrot.lane.b32.xlu1 %v2582_v35, %s2864_s23  ;;  %791 = vrot.lane.b32.xlu0 %v2581_v36, %s2864_s23 }
  0x8d   : > { %v263_v57 = vpop.permute.xlu1 %262  ;;  %v259_v58 = vpop.permute.xlu0 %258 }
  0x8e   : > { %285 = vst.msk [vmem:[#allocation2 + $0x8] sm:$0xf] %vm282_vm5, %v263_v57  ;;  %283 = vst.msk [vmem:[#allocation2] sm:$0xf] %vm282_vm5, %v259_v58 }
  0x8f   : > { %797 = vrot.lane.b32.xlu1 %v2584_v51, %s2864_s23  ;;  %795 = vrot.lane.b32.xlu0 %v2583_v52, %s2864_s23 }
  0x91   : > { %v265_v1 = vpop.permute.xlu1 %264  ;;  %v261_v2 = vpop.permute.xlu0 %260 }
  0x92   : > { %286 = vst.msk [vmem:[#allocation2 + $0xc] sm:$0xf] %vm282_vm5, %v265_v1  ;;  %284 = vst.msk [vmem:[#allocation2 + $0x4] sm:$0xf] %vm282_vm5, %v261_v2 }
  0x93   : > { %954 = vrot.lane.b32.xlu1 %v915_v59, %s2865_s30  ;;  %952 = vrot.lane.b32.xlu0 %v901_v61, %s2865_s30 }
  0x95   : > { %v475_v5 = vpop.permute.xlu1 %474  ;;  %v473_v6 = vpop.permute.xlu0 %472 }
  0x97   : > { %958 = vrot.lane.b32.xlu1 %v943_v3, %s2865_s30  ;;  %956 = vrot.lane.b32.xlu0 %v929_v4, %s2865_s30 }
  0x99   : > { %v425_v7 = vpop.permute.xlu1 %424  ;;  %v423_v8 = vpop.permute.xlu0 %422 }
  0x9a   : > { %448 = vst.msk [vmem:[#allocation2 + $0x4] sm:$0xf] %vm446_vm6, %v425_v7  ;;  %447 = vst.msk [vmem:[#allocation2] sm:$0xf] %vm446_vm6, %v423_v8  ;;  %v1139_v8 = vld [vmem:[#allocation3 + $0x18] sm:$0x1] }
  0x9b   : > { %497 = vst.msk [vmem:[#allocation2] sm:$0xf] %vm496_vm7, %v473_v6  ;;  %498 = vst.msk [vmem:[#allocation2 + $0x4] sm:$0xf] %vm496_vm7, %v475_v5  ;;  %v2866_v6 = vmov 0  }
  0x9c   : > { %1123 = vst.msk [vmem:[#allocation3] sm:$0xf] %vm1122_vm14, %v2866_v6  ;;  %1127 = vst.msk [vmem:[#allocation3 + $0x48] sm:$0xf] %vm1122_vm14, %v2866_v6 }
  0x9d   : > { %v429_v9 = vpop.permute.xlu1 %428  ;;  %v427_v10 = vpop.permute.xlu0 %426  ;;  %1125 = vst.msk [vmem:[#allocation3 + $0x4] sm:$0x1] %vm1124_vm15, %v2866_v6  ;;  %1128 = vst.msk [vmem:[#allocation3 + $0x4c] sm:$0x1] %vm1124_vm15, %v2866_v6  ;;  %vm2131_vm15 = vcmask 519616  }
  0x9e   : > { %450 = vst.msk [vmem:[#allocation2 + $0xc] sm:$0xf] %vm446_vm6, %v429_v9  ;;  %449 = vst.msk [vmem:[#allocation2 + $0x8] sm:$0xf] %vm446_vm6, %v427_v10  ;;  %v1165_v9 = vld [vmem:[#allocation3 + $0x1c] sm:$0x1] }
  0x9f   : > { %v1140_v10 = vsel %vm3260_vm3, 0, %v1139_v8  ;;  %v3318_v8 = vld [vmem:[%s3764_s2] ss:$0 sm:$0xff] }
  0xa0   : > { %1141 = vst [vmem:[#allocation3 + $0x18] sm:$0x1] %v1140_v10 }
  0xa1   : > { %v479_v11 = vpop.permute.xlu1 %478  ;;  %v477_v12 = vpop.permute.xlu0 %476 }
  0xa2   : > { %500 = vst.msk [vmem:[#allocation2 + $0xc] sm:$0xf] %vm496_vm7, %v479_v11  ;;  %499 = vst.msk [vmem:[#allocation2 + $0x8] sm:$0xf] %vm496_vm7, %v477_v12  ;;  %v1133_v12 = vld [vmem:[#allocation3 + $0x8] sm:$0x1] }
  0xa5   : > { %v525_v13 = vpop.permute.xlu1 %524  ;;  %v523_v14 = vpop.permute.xlu0 %522 }
  0xa6   : > { %548 = vst.msk [vmem:[#allocation2 + $0x4] sm:$0xf] %vm546_vm8, %v525_v13  ;;  %547 = vst.msk [vmem:[#allocation2] sm:$0xf] %vm546_vm8, %v523_v14  ;;  %v1159_v13 = vld [vmem:[#allocation3 + $0xc] sm:$0x1] }
  0xa7   : > { %v1166_v14 = vsel %vm3267_vm4, 0, %v1165_v9  ;;  %v1345_v9 = vld [vmem:[#allocation3] sm:$0xf] }
  0xa8   : > { %1167 = vst [vmem:[#allocation3 + $0x1c] sm:$0x1] %v1166_v14  ;;  %1353 = vst.msk [vmem:[#allocation4] sm:$0xf] %vm1122_vm14, %v1345_v9 }
  0xa9   : > { %v529_v15 = vpop.permute.xlu1 %528  ;;  %v527_v16 = vpop.permute.xlu0 %526 }
  0xaa   : > { %550 = vst.msk [vmem:[#allocation2 + $0xc] sm:$0xf] %vm546_vm8, %v529_v15  ;;  %549 = vst.msk [vmem:[#allocation2 + $0x8] sm:$0xf] %vm546_vm8, %v527_v16  ;;  %v1134_v15 = vsel %vm3260_vm3, 0, %v1133_v12  ;;  %v1160_v16 = vsel %vm3267_vm4, 0, %v1159_v13 }
  0xab   : > { %1135 = vst [vmem:[#allocation3 + $0x8] sm:$0x1] %v1134_v15  ;;  %1161 = vst [vmem:[#allocation3 + $0xc] sm:$0x1] %v1160_v16 }
  0xad   : > { %v686_v17 = vpop.permute.xlu1 %685  ;;  %v684_v18 = vpop.permute.xlu0 %683 }
  0xae   : > { %709 = vst.msk [vmem:[#allocation2 + $0x4] sm:$0xf] %vm707_vm9, %v686_v17  ;;  %708 = vst.msk [vmem:[#allocation2] sm:$0xf] %vm707_vm9, %v684_v18  ;;  %v1142_v17 = vld [vmem:[#allocation3 + $0x20] sm:$0x1] }
  0xaf   : > { %v1143_v18 = vsel %vm3260_vm3, 0, %v1142_v17 }
  0xb0   : > { %1144 = vst [vmem:[#allocation3 + $0x20] sm:$0x1] %v1143_v18 }
  0xb1   : > { %v690_v19 = vpop.permute.xlu1 %689  ;;  %v688_v20 = vpop.permute.xlu0 %687 }
  0xb2   : > { %711 = vst.msk [vmem:[#allocation2 + $0xc] sm:$0xf] %vm707_vm9, %v690_v19  ;;  %710 = vst.msk [vmem:[#allocation2 + $0x8] sm:$0xf] %vm707_vm9, %v688_v20  ;;  %v1168_v19 = vld [vmem:[#allocation3 + $0x24] sm:$0x1] }
  0xb3   : > { %v1136_v20 = vld [vmem:[#allocation3 + $0x10] sm:$0x1] }
  0xb5   : > { %v736_v21 = vpop.permute.xlu1 %735  ;;  %v734_v22 = vpop.permute.xlu0 %733 }
  0xb6   : > { %759 = vst.msk [vmem:[#allocation2 + $0x4] sm:$0xf] %vm757_vm10, %v736_v21  ;;  %758 = vst.msk [vmem:[#allocation2] sm:$0xf] %vm757_vm10, %v734_v22  ;;  %v1169_v21 = vsel %vm3267_vm4, 0, %v1168_v19  ;;  %v1137_v22 = vsel %vm3260_vm3, 0, %v1136_v20 }
  0xb7   : > { %1170 = vst [vmem:[#allocation3 + $0x24] sm:$0x1] %v1169_v21  ;;  %1138 = vst [vmem:[#allocation3 + $0x10] sm:$0x1] %v1137_v22 }
  0xb9   : > { %v740_v23 = vpop.permute.xlu1 %739  ;;  %v738_v24 = vpop.permute.xlu0 %737 }
  0xba   : > { %761 = vst.msk [vmem:[#allocation2 + $0xc] sm:$0xf] %vm757_vm10, %v740_v23  ;;  %760 = vst.msk [vmem:[#allocation2 + $0x8] sm:$0xf] %vm757_vm10, %v738_v24  ;;  %v1162_v23 = vld [vmem:[#allocation3 + $0x14] sm:$0x1] }
  0xbb   : > { %v1361_v24 = vld [vmem:[#allocation3] sm:$0xf] }
  0xbd   : > { %v786_v25 = vpop.permute.xlu1 %785  ;;  %v784_v26 = vpop.permute.xlu0 %783 }
  0xbe   : > { %809 = vst.msk [vmem:[#allocation2 + $0x4] sm:$0xf] %vm807_vm11, %v786_v25  ;;  %808 = vst.msk [vmem:[#allocation2] sm:$0xf] %vm807_vm11, %v784_v26  ;;  %v1163_v25 = vsel %vm3267_vm4, 0, %v1162_v23 }
  0xbf   : > { %v1362_v26 = vld [vmem:[#allocation3 + $0x4] sm:$0x1]  ;;  %1164 = vst [vmem:[#allocation3 + $0x14] sm:$0x1] %v1163_v25 }
  0xc1   : > { %v790_v27 = vpop.permute.xlu1 %789  ;;  %v788_v28 = vpop.permute.xlu0 %787 }
  0xc2   : > { %811 = vst.msk [vmem:[#allocation2 + $0xc] sm:$0xf] %vm807_vm11, %v790_v27  ;;  %810 = vst.msk [vmem:[#allocation2 + $0x8] sm:$0xf] %vm807_vm11, %v788_v28  ;;  %v1378_v27 = vshrl.u32 %v1361_v24, 16  ;;  %v1381_v28 = vshll.u32 %v1361_v24, 16 }
  0xc5   : > { %v947_v29 = vpop.permute.xlu1 %946  ;;  %v945_v30 = vpop.permute.xlu0 %944 }
  0xc6   : > { %970 = vst.msk [vmem:[#allocation2 + $0x4] sm:$0xf] %vm968_vm12, %v947_v29  ;;  %969 = vst.msk [vmem:[#allocation2] sm:$0xf] %vm968_vm12, %v945_v30  ;;  %v1387_v29 = vshll.u32 %v1362_v26, 16 }
  0xc7   : > { %v1993_v30 = vld [vmem:[#allocation3 + $0x48] sm:$0xf] }
  0xc9   : > { %v269_v32 = vpop.permute.xlu1 %268  ;;  %v267_v33 = vpop.permute.xlu0 %266 }
  0xca   : > { %288 = vst.msk [vmem:[#allocation2 + $0x14] sm:$0xf] %vm282_vm5, %v269_v32  ;;  %287 = vst.msk [vmem:[#allocation2 + $0x10] sm:$0xf] %vm282_vm5, %v267_v33  ;;  %v1380_v32 = vrot.slane %v1378_v27, 4  ;;  %v1383_v33 = vrot.slane %v1381_v28, 5 }
  0xcb   : > { %v1309_v28 = vld [vmem:[#allocation3 + $0x18] sm:$0xf] }
  0xcd   : > { %v951_v34 = vpop.permute.xlu1 %950  ;;  %v949_v35 = vpop.permute.xlu0 %948  ;;  %v2780_v36 = vld [vmem:[#allocation2] sm:$0xff]  }
  0xce   : > { %972 = vst.msk [vmem:[#allocation2 + $0xc] sm:$0xf] %vm968_vm12, %v951_v34  ;;  %971 = vst.msk [vmem:[#allocation2 + $0x8] sm:$0xf] %vm968_vm12, %v949_v35  ;;  %2695 = vmatprep.mubr.msk.bf16.mxu0 %vm1032_vm13, %v2780_v36  ;;  %v2094_v34 = vshrl.u32 %v1993_v30, 16  ;;  %v2097_v35 = vshll.u32 %v1993_v30, 16  ;;  %v1384_v36 = vor.u32 %v1383_v33, %v1380_v32 }
  0xd1   : > { %v273_v37 = vpop.permute.xlu1 %272  ;;  %v271_v38 = vpop.permute.xlu0 %270 }
  0xd2   : > { %290 = vst.msk [vmem:[#allocation2 + $0x1c] sm:$0xf] %vm282_vm5, %v273_v37  ;;  %289 = vst.msk [vmem:[#allocation2 + $0x18] sm:$0xf] %vm282_vm5, %v271_v38  ;;  %v1389_v37 = vrot.slane %v1387_v29, 5  ;;  %vm1554_vm5 = vcmask 1042432  }
  0xd3   : > { %v1994_v38 = vld [vmem:[#allocation3 + $0x4c] sm:$0x1]  ;;  %v1312_v29 = vld [vmem:[#allocation3 + $0x1c] sm:$0x1] }
  0xd5   : > { %v433_v39 = vpop.permute.xlu1 %432  ;;  %v431_v40 = vpop.permute.xlu0 %430  ;;  %v2782_v41 = vld [vmem:[#allocation2 + $0x8] sm:$0xff]  }
  0xd6   : > { %452 = vst.msk [vmem:[#allocation2 + $0x14] sm:$0xf] %vm446_vm6, %v433_v39  ;;  %451 = vst.msk [vmem:[#allocation2 + $0x10] sm:$0xf] %vm446_vm6, %v431_v40  ;;  %2696 = vmatmul.mubr.msk.bf16.vlgmr.msra.gmra.mrb[0].mxu0 %vm1032_vm13, %v2782_v41  ;;  %v2096_v39 = vrot.slane %v2094_v34, 4  ;;  %v2099_v40 = vrot.slane %v2097_v35, 5 }
  0xd7   : > { %v1937_v41 = vld [vmem:[#allocation3 + $0x48] sm:$0xf] }
  0xd8   : > { %1960 = vrot.lane.b32.xlu1 %v1937_v41, %s2867_s8  ;;  %v1297_v35 = vld [vmem:[#allocation3 + $0x8] sm:$0xf] }
  0xd9   : > { %v437_v42 = vpop.permute.xlu1 %436  ;;  %v435_v43 = vpop.permute.xlu0 %434 }
  0xda   : > { %454 = vst.msk [vmem:[#allocation2 + $0x1c] sm:$0xf] %vm446_vm6, %v437_v42  ;;  %453 = vst.msk [vmem:[#allocation2 + $0x18] sm:$0xf] %vm446_vm6, %v435_v43  ;;  %v1385_v42 = vrot.slane %v1384_v36, 4  ;;  %v2100_v43 = vor.u32 %v2099_v40, %v2096_v39  ;;  %vm1555_vm6 = vcmask 1046532  }
  0xdb   : > { %v1300_v40 = vld [vmem:[#allocation3 + $0xc] sm:$0x1] }
  0xdd   : > { %v483_v44 = vpop.permute.xlu1 %482  ;;  %v481_v45 = vpop.permute.xlu0 %480 }
  0xde   : > { %502 = vst.msk [vmem:[#allocation2 + $0x14] sm:$0xf] %vm496_vm7, %v483_v44  ;;  %501 = vst.msk [vmem:[#allocation2 + $0x10] sm:$0xf] %vm496_vm7, %v481_v45  ;;  %v2103_v44 = vshll.u32 %v1994_v38, 16  ;;  %v1390_v45 = vsel %vm2979_vm2, %v1385_v42, %v1389_v37 }
  0xdf   : > { %1489 = vrot.lane.b32.xlu0 %v1390_v45, %s2860_s12 }
  0xe1   : > { %v487_v46 = vpop.permute.xlu1 %486  ;;  %v485_v47 = vpop.permute.xlu0 %484 }
  0xe2   : > { %504 = vst.msk [vmem:[#allocation2 + $0x1c] sm:$0xf] %vm496_vm7, %v487_v46  ;;  %503 = vst.msk [vmem:[#allocation2 + $0x18] sm:$0xf] %vm496_vm7, %v485_v47  ;;  %v2101_v46 = vrot.slane %v2100_v43, 4 }
  0xe3   : > { %v1522_v47 = vld [vmem:[#allocation3] sm:$0xe]  ;;  %vm3289_vm7 = vmor %vm1554_vm5, %vm1555_vm6 }
  0xe5   : > { %v533_v48 = vpop.permute.xlu1 %532  ;;  %v531_v49 = vpop.permute.xlu0 %530 }
  0xe6   : > { %552 = vst.msk [vmem:[#allocation2 + $0x14] sm:$0xf] %vm546_vm8, %v533_v48  ;;  %551 = vst.msk [vmem:[#allocation2 + $0x10] sm:$0xf] %vm546_vm8, %v531_v49  ;;  %v2105_v48 = vrot.slane %v2103_v44, 5 }
  0xe7   : > { %v1523_v49 = vld [vmem:[#allocation3 + $0x4] sm:$0x1] }
  0xe9   : > { %v537_v50 = vpop.permute.xlu1 %536  ;;  %v535_v51 = vpop.permute.xlu0 %534 }
  0xea   : > { %554 = vst.msk [vmem:[#allocation2 + $0x1c] sm:$0xf] %vm546_vm8, %v537_v50  ;;  %553 = vst.msk [vmem:[#allocation2 + $0x18] sm:$0xf] %vm546_vm8, %v535_v51  ;;  %v2621_v51 = vrot.slane %v1522_v47, 9  ;;  %vm1513_vm8 = vcmask 126016  }
  0xed   : > { %v694_v52 = vpop.permute.xlu1 %693  ;;  %v692_v53 = vpop.permute.xlu0 %691 }
  0xee   : > { %713 = vst.msk [vmem:[#allocation2 + $0x14] sm:$0xf] %vm707_vm9, %v694_v52  ;;  %712 = vst.msk [vmem:[#allocation2 + $0x10] sm:$0xf] %vm707_vm9, %v692_v53  ;;  %v1559_v52 = vrot.slane %v1523_v49, 5  ;;  %v2106_v53 = vsel %vm2979_vm2, %v2101_v46, %v2105_v48 }
  0xef   : > { %2121 = vrot.lane.b32.xlu1 %v2106_v53, %s2868_s9  ;;  %v1315_v46 = vld [vmem:[#allocation3 + $0x20] sm:$0xf]  ;;  %v1318_v49 = vld [vmem:[#allocation3 + $0x24] sm:$0x1] }
  0xf1   : > { %v698_v54 = vpop.permute.xlu1 %697  ;;  %v696_v55 = vpop.permute.xlu0 %695 }
  0xf2   : > { %715 = vst.msk [vmem:[#allocation2 + $0x1c] sm:$0xf] %vm707_vm9, %v698_v54  ;;  %714 = vst.msk [vmem:[#allocation2 + $0x18] sm:$0xf] %vm707_vm9, %v696_v55  ;;  %v1560_v54 = vsel %vm3289_vm7, %v2621_v51, %v1559_v52  ;;  %v1151_v55 = vld [vmem:[#allocation3 + $0x38] sm:$0x1] }
  0xf3   : > { %1589 = vrot.lane.b32.xlu0 %v1560_v54, %s2861_s13  ;;  %vm1613_vm9 = vcmask 191616  }
  0xf5   : > { %v744_v56 = vpop.permute.xlu1 %743  ;;  %v742_v57 = vpop.permute.xlu0 %741 }
  0xf6   : > { %763 = vst.msk [vmem:[#allocation2 + $0x14] sm:$0xf] %vm757_vm10, %v744_v56  ;;  %762 = vst.msk [vmem:[#allocation2 + $0x10] sm:$0xf] %vm757_vm10, %v742_v57  ;;  %v1177_v56 = vld [vmem:[#allocation3 + $0x3c] sm:$0x1] }
  0xf7   : > { %v1152_v57 = vsel %vm3260_vm3, 0, %v1151_v55 }
  0xf8   : > { %1153 = vst [vmem:[#allocation3 + $0x38] sm:$0x1] %v1152_v57  ;;  %v1303_v57 = vld [vmem:[#allocation3 + $0x10] sm:$0xf] }
  0xf9   : > { %v748_v58 = vpop.permute.xlu1 %747  ;;  %v746_v59 = vpop.permute.xlu0 %745 }
  0xfa   : > { %765 = vst.msk [vmem:[#allocation2 + $0x1c] sm:$0xf] %vm757_vm10, %v748_v58  ;;  %764 = vst.msk [vmem:[#allocation2 + $0x18] sm:$0xf] %vm757_vm10, %v746_v59  ;;  %v1178_v58 = vsel %vm3267_vm4, 0, %v1177_v56 }
  0xfb   : > { %1179 = vst [vmem:[#allocation3 + $0x3c] sm:$0x1] %v1178_v58  ;;  %v1145_v59 = vld [vmem:[#allocation3 + $0x28] sm:$0x1]  ;;  %vm3341_vm10 = vmand %vm1122_vm14, %vm1157_vm1  ;;  %v1306_v58 = vld [vmem:[#allocation3 + $0x14] sm:$0x1] }
  0xfc   : > { %vm2308_vm1 = vcmask 588800  }
  0xfd   : > { %v794_v60 = vpop.permute.xlu1 %793  ;;  %v792_v61 = vpop.permute.xlu0 %791 }
  0xfe   : > { %813 = vst.msk [vmem:[#allocation2 + $0x14] sm:$0xf] %vm807_vm11, %v794_v60  ;;  %812 = vst.msk [vmem:[#allocation2 + $0x10] sm:$0xf] %vm807_vm11, %v792_v61  ;;  %v1171_v60 = vld [vmem:[#allocation3 + $0x2c] sm:$0x1] }
  0xff   : > { %v1146_v61 = vsel %vm3260_vm3, 0, %v1145_v59 }
 0x100   : > { %1147 = vst [vmem:[#allocation3 + $0x28] sm:$0x1] %v1146_v61 }
 0x101   : > { %v798_v62 = vpop.permute.xlu1 %797  ;;  %v796_v63 = vpop.permute.xlu0 %795 }
 0x102   : > { %815 = vst.msk [vmem:[#allocation2 + $0x1c] sm:$0xf] %vm807_vm11, %v798_v62  ;;  %814 = vst.msk [vmem:[#allocation2 + $0x18] sm:$0xf] %vm807_vm11, %v796_v63  ;;  %v1172_v62 = vsel %vm3267_vm4, 0, %v1171_v60  ;;  %vm1662_vm11 = vcmask 257216  }
 0x103   : > { %v1154_v63 = vld [vmem:[#allocation3 + $0x40] sm:$0x1]  ;;  %1173 = vst [vmem:[#allocation3 + $0x2c] sm:$0x1] %v1172_v62 }
 0x105   : > { %v955_v0 = vpop.permute.xlu1 %954  ;;  %v953_v1 = vpop.permute.xlu0 %952 }
 0x106   : > { %974 = vst.msk [vmem:[#allocation2 + $0x14] sm:$0xf] %vm968_vm12, %v955_v0  ;;  %973 = vst.msk [vmem:[#allocation2 + $0x10] sm:$0xf] %vm968_vm12, %v953_v1  ;;  %v1180_v0 = vld [vmem:[#allocation3 + $0x44] sm:$0x1] }
 0x107   : > { %v1155_v1 = vsel %vm3260_vm3, 0, %v1154_v63 }
 0x108   : > { %1156 = vst [vmem:[#allocation3 + $0x40] sm:$0x1] %v1155_v1 }
 0x109   : > { %v959_v2 = vpop.permute.xlu1 %958  ;;  %v957_v3 = vpop.permute.xlu0 %956 }
 0x10a   : > { %976 = vst.msk [vmem:[#allocation2 + $0x1c] sm:$0xf] %vm968_vm12, %v959_v2  ;;  %975 = vst.msk [vmem:[#allocation2 + $0x18] sm:$0xf] %vm968_vm12, %v957_v3  ;;  %v1181_v2 = vsel %vm3267_vm4, 0, %v1180_v0  ;;  %vm2321_vm12 = vcmask 1043456  }
 0x10b   : > { %v1148_v3 = vld [vmem:[#allocation3 + $0x30] sm:$0x1]  ;;  %1182 = vst [vmem:[#allocation3 + $0x44] sm:$0x1] %v1181_v2 }
 0x10d   : > { %v2783_v4 = vld [vmem:[#allocation2 + $0x10] sm:$0xff]  }
 0x10e   : > { %2699 = vmatprep.mubr.msk.bf16.mxu0 %vm1032_vm13, %v2783_v4  ;;  %v1174_v4 = vld [vmem:[#allocation3 + $0x34] sm:$0x1] }
 0x10f   : > { %v1175_v6 = vsel %vm3267_vm4, 0, %v1174_v4 }
 0x110   : > { %1176 = vst [vmem:[#allocation3 + $0x34] sm:$0x1] %v1175_v6 }
 0x111   : > { %v2784_v5 = vld [vmem:[#allocation2 + $0x18] sm:$0xff]  }
 0x112   : > { %2700 = vmatmul.mubr.msk.bf16.gmra.mrb[4].mxu0 %vm1032_vm13, %v2784_v5  ;;  %v1149_v5 = vsel %vm3260_vm3, 0, %v1148_v3  ;;  %vm1920_vm13 = vcmask 388416  }
 0x113   : > { %1150 = vst [vmem:[#allocation3 + $0x30] sm:$0x1] %v1149_v5 }
 0x151   : > { %v1490_v18 = vpop.permute.xlu0 %1489 }
 0x152   : > { %1514 = vst.msk [vmem:[#allocation4] sm:$0xf] %vm1513_vm8, %v1490_v18 }
 0x165   : > { %v1590_v27 = vpop.permute.xlu0 %1589 }
 0x166   : > { %1614 = vst.msk [vmem:[#allocation4] sm:$0xf] %vm1613_vm9, %v1590_v27 }
 0x1a9   : > { %v2697_v10 = vpop.f32.mrb[0].mxu0 }
 0x1aa   : > { %v3322_v12 = vadd.f32 %v2697_v10, %v3318_v8  ;;  %v1083_v13 = vpop.f32.mrb[1].mxu0 }
 0x1ab   : > { %v3325_v14 = vadd.f32 %v3318_v8, %v1083_v13  ;;  %v2698_v11 = vpop.f32.mrb[2].mxu0 }
 0x1ac   : > { %v1116_v15 = vmax.f32 %v3322_v12, 0.0  ;;  %v3329_v16 = vadd.f32 %v2698_v11, %v3318_v8  ;;  %v1086_v17 = vpop.f32.mrb[3].mxu0 }
 0x1ad   : > { %v1114_v19 = vmax.f32 %v3325_v14, 0.0  ;;  %v3333_v20 = vadd.f32 %v3318_v8, %v1086_v17 }
 0x1ae   : > { %v2666_v21 = vpack.c.bf16 %v1116_v15, %v1116_v15  ;;  %v1117_v22 = vmax.f32 %v3329_v16, 0.0 }
 0x1af   : > { %v2664_v23 = vpack.c.bf16 %v1114_v19, %v1114_v19  ;;  %v1115_v24 = vmax.f32 %v3333_v20, 0.0 }
 0x1b0   : > { %v1232_v25 = vshrl.u32 %v2666_v21, 16  ;;  %v2667_v26 = vpack.c.bf16 %v1117_v22, %v1117_v22  ;;  %v1235_v34 = vshll.u32 %v2666_v21, 16 }
 0x1b1   : > { %v1216_v30 = vshrl.u32 %v2664_v23, 16  ;;  %v2665_v32 = vpack.c.bf16 %v1115_v24, %v1115_v24  ;;  %v1219_v39 = vshll.u32 %v2664_v23, 16 }
 0x1b2   : > { %v1234_v33 = vrot.slane %v1232_v25, 7  ;;  %v1240_v36 = vshrl.u32 %v2667_v26, 16  ;;  %v1243_v45 = vshll.u32 %v2667_v26, 16 }
 0x1b3   : > { %v1218_v38 = vrot.slane %v1216_v30, 7  ;;  %v1224_v41 = vshrl.u32 %v2665_v32, 16  ;;  %v1227_v52 = vshll.u32 %v2665_v32, 16 }
 0x1b4   : > { %v1237_v42 = vor.u32 %v1235_v34, %v1234_v33  ;;  %v1238_v43 = vrot.slane %v1234_v33, 4  ;;  %v1242_v44 = vrot.slane %v1240_v36, 7 }
 0x1b5   : > { %v1221_v47 = vor.u32 %v1219_v39, %v1218_v38  ;;  %v1222_v48 = vrot.slane %v1218_v38, 4  ;;  %v1226_v51 = vrot.slane %v1224_v41, 7 }
 0x1b6   : > { %v1310_v53 = vsel %vm3341_vm10, %v1237_v42, %v1309_v28  ;;  %v1313_v54 = vsel %vm3260_vm3, %v1238_v43, %v1312_v29  ;;  %v1245_v55 = vor.u32 %v1243_v45, %v1242_v44  ;;  %v1246_v56 = vrot.slane %v1242_v44, 4 }
 0x1b7   : > { %1311 = vst [vmem:[#allocation3 + $0x18] sm:$0xf] %v1310_v53  ;;  %1314 = vst [vmem:[#allocation3 + $0x1c] sm:$0x1] %v1313_v54  ;;  %v1298_v59 = vsel %vm3341_vm10, %v1221_v47, %v1297_v35  ;;  %v1301_v60 = vsel %vm3260_vm3, %v1222_v48, %v1300_v40  ;;  %v1229_v61 = vor.u32 %v1227_v52, %v1226_v51  ;;  %v1230_v62 = vrot.slane %v1226_v51, 4 }
 0x1b8   : > { %1299 = vst [vmem:[#allocation3 + $0x8] sm:$0xf] %v1298_v59  ;;  %1302 = vst [vmem:[#allocation3 + $0xc] sm:$0x1] %v1301_v60  ;;  %v1316_v63 = vsel %vm3341_vm10, %v1245_v55, %v1315_v46  ;;  %v1319_v0 = vsel %vm3260_vm3, %v1246_v56, %v1318_v49 }
 0x1b9   : > { %1317 = vst [vmem:[#allocation3 + $0x20] sm:$0xf] %v1316_v63  ;;  %1320 = vst [vmem:[#allocation3 + $0x24] sm:$0x1] %v1319_v0  ;;  %v1304_v1 = vsel %vm3341_vm10, %v1229_v61, %v1303_v57  ;;  %v1307_v2 = vsel %vm3260_vm3, %v1230_v62, %v1306_v58 }
 0x1ba   : > { %1305 = vst [vmem:[#allocation3 + $0x10] sm:$0xf] %v1304_v1  ;;  %1308 = vst [vmem:[#allocation3 + $0x14] sm:$0x1] %v1307_v2 }
 0x1be   : > { %v1931_v3 = vld [vmem:[#allocation3 + $0x18] sm:$0xf]  ;;  %v1529_v6 = vld [vmem:[#allocation3 + $0x1c] sm:$0x1] }
 0x1bf   : > { %v1624_v4 = vld [vmem:[#allocation3 + $0x18] sm:$0xf]  ;;  %1948 = vrot.lane.b32.xlu1 %v1931_v3, %s2867_s8  ;;  %v1622_v10 = vld [vmem:[#allocation3 + $0x8] sm:$0xf]  ;;  %v1571_v11 = vrot.slane %v1529_v6, 5 }
 0x1c0   : > { %1642 = vrot.lane.b32.xlu0 %v1624_v4, %s2863_s15  ;;  %v1528_v5 = vld [vmem:[#allocation3 + $0x18] sm:$0xe]  ;;  %v1625_v9 = vld [vmem:[#allocation3 + $0x20] sm:$0xf]  ;;  %v1837_v17 = vld [vmem:[#allocation3 + $0x1c] sm:$0x1] }
 0x1c1   : > { %v2624_v13 = vrot.slane %v1528_v5, 9  ;;  %v1836_v15 = vld [vmem:[#allocation3 + $0x18] sm:$0xe]  ;;  %v1932_v19 = vld [vmem:[#allocation3 + $0x20] sm:$0xf]  ;;  %v1874_v22 = vrot.slane %v1837_v17, 5 }
 0x1c2   : > { %v2631_v21 = vrot.slane %v1836_v15, 9  ;;  %v2142_v23 = vld [vmem:[#allocation3 + $0x18] sm:$0xe]  ;;  %v2143_v24 = vld [vmem:[#allocation3 + $0x1c] sm:$0x1] }
 0x1c3   : > { %1644 = vrot.lane.b32.xlu1 %v1625_v9, %s2863_s15  ;;  %v1572_v18 = vsel %vm3289_vm7, %v2624_v13, %v1571_v11  ;;  %v1623_v25 = vld [vmem:[#allocation3 + $0x10] sm:$0xf]  ;;  %v2638_v27 = vrot.slane %v2142_v23, 9  ;;  %v2178_v28 = vrot.slane %v2143_v24, 5  ;;  %v1832_v29 = vld [vmem:[#allocation3 + $0x8] sm:$0xe] }
 0x1c4   : > { %1638 = vrot.lane.b32.xlu0 %v1622_v10, %s2863_s15  ;;  %v1875_v26 = vsel %vm3289_vm7, %v2631_v21, %v1874_v22  ;;  %v1833_v30 = vld [vmem:[#allocation3 + $0xc] sm:$0x1]  ;;  %v1524_v32 = vld [vmem:[#allocation3 + $0x8] sm:$0xe]  ;;  %v1930_v34 = vld [vmem:[#allocation3 + $0x10] sm:$0xf] }
 0x1c5   : > { %v1525_v33 = vld [vmem:[#allocation3 + $0xc] sm:$0x1]  ;;  %v2629_v35 = vrot.slane %v1832_v29, 9  ;;  %v1866_v36 = vrot.slane %v1833_v30, 5  ;;  %v2179_v38 = vsel %vm3289_vm7, %v2638_v27, %v2178_v28  ;;  %v2622_v39 = vrot.slane %v1524_v32, 9 }
 0x1c6   : > { %v1563_v40 = vrot.slane %v1525_v33, 5  ;;  %v2144_v41 = vld [vmem:[#allocation3 + $0x20] sm:$0xe]  ;;  %v2145_v42 = vld [vmem:[#allocation3 + $0x24] sm:$0x1] }
 0x1c7   : > { %1595 = vrot.lane.b32.xlu1 %v1572_v18, %s2861_s13  ;;  %v1838_v43 = vld [vmem:[#allocation3 + $0x20] sm:$0xe]  ;;  %v1839_v44 = vld [vmem:[#allocation3 + $0x24] sm:$0x1]  ;;  %v2639_v45 = vrot.slane %v2144_v41, 9  ;;  %v2182_v46 = vrot.slane %v2145_v42, 5  ;;  %v1867_v47 = vsel %vm3289_vm7, %v2629_v35, %v1866_v36 }
 0x1c8   : > { %1950 = vrot.lane.b32.xlu0 %v1932_v19, %s2867_s8  ;;  %v1564_v48 = vsel %vm3289_vm7, %v2622_v39, %v1563_v40  ;;  %v2632_v49 = vrot.slane %v1838_v43, 9  ;;  %v1878_v51 = vrot.slane %v1839_v44, 5  ;;  %v1530_v52 = vld [vmem:[#allocation3 + $0x20] sm:$0xe]  ;;  %v1531_v53 = vld [vmem:[#allocation3 + $0x24] sm:$0x1] }
 0x1c9   : > { %v1834_v54 = vld [vmem:[#allocation3 + $0x10] sm:$0xe]  ;;  %v1835_v55 = vld [vmem:[#allocation3 + $0x14] sm:$0x1]  ;;  %v2183_v56 = vsel %vm3289_vm7, %v2639_v45, %v2182_v46  ;;  %v2625_v57 = vrot.slane %v1530_v52, 9  ;;  %v1575_v59 = vrot.slane %v1531_v53, 5 }
 0x1ca   : > { %v1879_v58 = vsel %vm3289_vm7, %v2632_v49, %v1878_v51  ;;  %v2630_v60 = vrot.slane %v1834_v54, 9  ;;  %v1870_v61 = vrot.slane %v1835_v55, 5  ;;  %v1526_v62 = vld [vmem:[#allocation3 + $0x10] sm:$0xe]  ;;  %v1527_v63 = vld [vmem:[#allocation3 + $0x14] sm:$0x1] }
 0x1cb   : > { %1640 = vrot.lane.b32.xlu1 %v1623_v25, %s2863_s15  ;;  %v1576_v0 = vsel %vm3289_vm7, %v2625_v57, %v1575_v59  ;;  %v2623_v2 = vrot.slane %v1526_v62, 9  ;;  %v1567_v3 = vrot.slane %v1527_v63, 5  ;;  %v2140_v4 = vld [vmem:[#allocation3 + $0x10] sm:$0xe]  ;;  %v2141_v5 = vld [vmem:[#allocation3 + $0x14] sm:$0x1] }
 0x1cc   : > { %1900 = vrot.lane.b32.xlu0 %v1875_v26, %s2869_s14  ;;  %v1871_v1 = vsel %vm3289_vm7, %v2630_v60, %v1870_v61  ;;  %v2637_v9 = vrot.slane %v2140_v4, 9  ;;  %v2174_v10 = vrot.slane %v2141_v5, 5  ;;  %v1348_v13 = vld [vmem:[#allocation3 + $0x18] sm:$0xf]  ;;  %v1346_v11 = vld [vmem:[#allocation3 + $0x8] sm:$0xf] }
 0x1cd   : > { %v1568_v6 = vsel %vm3289_vm7, %v2623_v2, %v1567_v3  ;;  %1356 = vst.msk [vmem:[#allocation4 + $0xc] sm:$0xf] %vm1122_vm14, %v1348_v13  ;;  %1354 = vst.msk [vmem:[#allocation4 + $0x4] sm:$0xf] %vm1122_vm14, %v1346_v11  ;;  %v1349_v15 = vld [vmem:[#allocation3 + $0x20] sm:$0xf] }
 0x1ce   : > { %v2175_v17 = vsel %vm3289_vm7, %v2637_v9, %v2174_v10  ;;  %1357 = vst.msk [vmem:[#allocation4 + $0x10] sm:$0xf] %vm1122_vm14, %v1349_v15  ;;  %v1347_v18 = vld [vmem:[#allocation3 + $0x10] sm:$0xf]  ;;  %v1675_v21 = vld [vmem:[#allocation3 + $0x18] sm:$0xf] }
 0x1cf   : > { %2206 = vrot.lane.b32.xlu1 %v2179_v38, %s2870_s16  ;;  %1355 = vst.msk [vmem:[#allocation4 + $0x8] sm:$0xf] %vm1122_vm14, %v1347_v18  ;;  %v1367_v24 = vld [vmem:[#allocation3 + $0x18] sm:$0xf]  ;;  %v1716_v30 = vshrl.u32 %v1675_v21, 16  ;;  %v1719_v32 = vshll.u32 %v1675_v21, 16 }
 0x1d0   : > { %1946 = vrot.lane.b32.xlu0 %v1930_v34, %s2867_s8  ;;  %v1420_v35 = vshrl.u32 %v1367_v24, 16  ;;  %v3420_v39 = vld [vmem:[#allocation3 + $0x8] sm:$0xf]  ;;  %v1423_v42 = vshll.u32 %v1367_v24, 16  ;;  %v1339_v61 = vld [vmem:[#allocation3 + $0x40] sm:$0xf] }
 0x1d1   : > { %v3423_v45 = vrot.slane %v1716_v30, 4  ;;  %v3425_v46 = vrot.slane %v1719_v32, 5  ;;  %v1688_v52 = vshrl.u32 %v3420_v39, 16  ;;  %v1321_v55 = vld [vmem:[#allocation3 + $0x28] sm:$0xf] }
 0x1d2   : > { %v1422_v51 = vrot.slane %v1420_v35, 4  ;;  %v1425_v63 = vrot.slane %v1423_v42, 5  ;;  %v1342_v4 = vld [vmem:[#allocation3 + $0x44] sm:$0x1]  ;;  %v1981_v13 = vld [vmem:[#allocation3 + $0x18] sm:$0xf] }
 0x1d3   : > { %1591 = vrot.lane.b32.xlu1 %v1564_v48, %s2861_s13  ;;  %v1336_v48 = vld [vmem:[#allocation3 + $0x3c] sm:$0x1]  ;;  %v1330_v21 = vld [vmem:[#allocation3 + $0x34] sm:$0x1]  ;;  %v2010_v35 = vshrl.u32 %v1981_v13, 16 }
 0x1d4   : > { %1896 = vrot.lane.b32.xlu0 %v1867_v47, %s2869_s14  ;;  %v1333_v47 = vld [vmem:[#allocation3 + $0x38] sm:$0xf]  ;;  %v1676_v32 = vld [vmem:[#allocation3 + $0x1c] sm:$0x1]  ;;  %v1363_v42 = vld [vmem:[#allocation3 + $0x8] sm:$0xf] }
 0x1d5   : > { %v1395_v7 = vshll.u32 %v1363_v42, 16 }
 0x1d7   : > { %1902 = vrot.lane.b32.xlu1 %v1879_v58, %s2869_s14  ;;  %v1691_v58 = vshll.u32 %v3420_v39, 16 }
 0x1d8   : > { %2208 = vrot.lane.b32.xlu0 %v2183_v56, %s2870_s16  ;;  %v1324_v56 = vld [vmem:[#allocation3 + $0x2c] sm:$0x1] }
 0x1db   : > { %1898 = vrot.lane.b32.xlu1 %v1871_v1, %s2869_s14 }
 0x1dc   : > { %1597 = vrot.lane.b32.xlu0 %v1576_v0, %s2861_s13 }
 0x1e0   : > { %1593 = vrot.lane.b32.xlu0 %v1568_v6, %s2861_s13 }
 0x1e4   : > { %2204 = vrot.lane.b32.xlu0 %v2175_v17, %s2870_s16 }
 0x1e5   : > { %v2701_v19 = vpop.f32.mrb[4].mxu0 }
 0x1e6   : > { %v3406_v22 = vadd.f32 %v2701_v19, %v3318_v8  ;;  %v1099_v23 = vpop.f32.mrb[5].mxu0  ;;  %v1327_v19 = vld [vmem:[#allocation3 + $0x30] sm:$0xf] }
 0x1e7   : > { %v3409_v25 = vadd.f32 %v3318_v8, %v1099_v23  ;;  %v2702_v26 = vpop.f32.mrb[6].mxu0 }
 0x1e8   : > { %v1120_v27 = vmax.f32 %v3406_v22, 0.0  ;;  %v3413_v28 = vadd.f32 %v2702_v26, %v3318_v8  ;;  %v1102_v29 = vpop.f32.mrb[7].mxu0 }
 0x1e9   : > { %v1118_v33 = vmax.f32 %v3409_v25, 0.0  ;;  %v3417_v34 = vadd.f32 %v3318_v8, %v1102_v29 }
 0x1ea   : > { %v2670_v36 = vpack.c.bf16 %v1120_v27, %v1120_v27  ;;  %v1121_v38 = vmax.f32 %v3413_v28, 0.0 }
 0x1eb   : > { %v2668_v40 = vpack.c.bf16 %v1118_v33, %v1118_v33  ;;  %v1119_v41 = vmax.f32 %v3417_v34, 0.0  ;;  %v1368_v33 = vld [vmem:[#allocation3 + $0x1c] sm:$0x1] }
 0x1ec   : > { %v1264_v43 = vshrl.u32 %v2670_v36, 16  ;;  %v2671_v44 = vpack.c.bf16 %v1121_v38, %v1121_v38  ;;  %v1267_v54 = vshll.u32 %v2670_v36, 16  ;;  %v2013_v36 = vshll.u32 %v1981_v13, 16 }
 0x1ed   : > { %v1248_v8 = vshrl.u32 %v2668_v40, 16  ;;  %v2669_v49 = vpack.c.bf16 %v1119_v41, %v1119_v41  ;;  %v1251_v60 = vshll.u32 %v2668_v40, 16  ;;  %v1722_v40 = vor.u32 %v3425_v46, %v3423_v45  ;;  %v1983_v46 = vld [vmem:[#allocation3 + $0x20] sm:$0xf] }
 0x1ee   : > { %v1266_v53 = vrot.slane %v1264_v43, 7  ;;  %v1272_v57 = vshrl.u32 %v2671_v44, 16  ;;  %v1275_v3 = vshll.u32 %v2671_v44, 16  ;;  %v1426_v41 = vor.u32 %v1425_v63, %v1422_v51 }
 0x1ef   : > { %v1250_v59 = vrot.slane %v1248_v8, 7  ;;  %v1256_v62 = vshrl.u32 %v2669_v49, 16  ;;  %v1259_v10 = vshll.u32 %v2669_v49, 16  ;;  %v1725_v43 = vshll.u32 %v1676_v32, 16 }
 0x1f0   : > { %v1269_v0 = vor.u32 %v1267_v54, %v1266_v53  ;;  %v1270_v1 = vrot.slane %v1266_v53, 4  ;;  %v1274_v2 = vrot.slane %v1272_v57, 7  ;;  %v1429_v44 = vshll.u32 %v1368_v33, 16  ;;  %v1672_v57 = vld [vmem:[#allocation3 + $0xc] sm:$0x1] }
 0x1f1   : > { %v1253_v5 = vor.u32 %v1251_v60, %v1250_v59  ;;  %v1254_v6 = vrot.slane %v1250_v59, 4  ;;  %v1258_v9 = vrot.slane %v1256_v62, 7  ;;  %v2012_v8 = vrot.slane %v2010_v35, 4  ;;  %v1369_v62 = vld [vmem:[#allocation3 + $0x20] sm:$0xf] }
 0x1f2   : > { %v1334_v11 = vsel %vm3341_vm10, %v1269_v0, %v1333_v47  ;;  %v1337_v15 = vsel %vm3260_vm3, %v1270_v1, %v1336_v48  ;;  %v1277_v17 = vor.u32 %v1275_v3, %v1274_v2  ;;  %v1278_v18 = vrot.slane %v1274_v2, 4  ;;  %v1677_v3 = vld [vmem:[#allocation3 + $0x20] sm:$0xf] }
 0x1f3   : > { %1335 = vst [vmem:[#allocation3 + $0x38] sm:$0xf] %v1334_v11  ;;  %1338 = vst [vmem:[#allocation3 + $0x3c] sm:$0x1] %v1337_v15  ;;  %v1322_v23 = vsel %vm3341_vm10, %v1253_v5, %v1321_v55  ;;  %v1325_v24 = vsel %vm3260_vm3, %v1254_v6, %v1324_v56  ;;  %v1261_v26 = vor.u32 %v1259_v10, %v1258_v9  ;;  %v1262_v27 = vrot.slane %v1258_v9, 4 }
 0x1f4   : > { %1323 = vst [vmem:[#allocation3 + $0x28] sm:$0xf] %v1322_v23  ;;  %1326 = vst [vmem:[#allocation3 + $0x2c] sm:$0x1] %v1325_v24  ;;  %v1340_v29 = vsel %vm3341_vm10, %v1277_v17, %v1339_v61  ;;  %v1343_v30 = vsel %vm3260_vm3, %v1278_v18, %v1342_v4  ;;  %v1690_v47 = vrot.slane %v1688_v52, 4  ;;  %v1693_v48 = vrot.slane %v1691_v58, 5 }
 0x1f5   : > { %1341 = vst [vmem:[#allocation3 + $0x40] sm:$0xf] %v1340_v29  ;;  %1344 = vst [vmem:[#allocation3 + $0x44] sm:$0x1] %v1343_v30  ;;  %v1328_v38 = vsel %vm3341_vm10, %v1261_v26, %v1327_v19  ;;  %v1331_v39 = vsel %vm3260_vm3, %v1262_v27, %v1330_v21  ;;  %v2015_v49 = vrot.slane %v2013_v36, 5  ;;  %v1723_v53 = vrot.slane %v1722_v40, 4 }
 0x1f6   : > { %1329 = vst [vmem:[#allocation3 + $0x30] sm:$0xf] %v1328_v38  ;;  %1332 = vst [vmem:[#allocation3 + $0x34] sm:$0x1] %v1331_v39  ;;  %v1392_v54 = vshrl.u32 %v1363_v42, 16  ;;  %v1427_v56 = vrot.slane %v1426_v41, 4  ;;  %v1694_v59 = vor.u32 %v1693_v48, %v1690_v47 }
 0x1f7   : > { %v1727_v45 = vrot.slane %v1725_v43, 5  ;;  %v1431_v51 = vrot.slane %v1429_v44, 5  ;;  %v2016_v60 = vor.u32 %v2015_v49, %v2012_v8  ;;  %v1982_v58 = vld [vmem:[#allocation3 + $0x1c] sm:$0x1]  ;;  %v1397_v0 = vrot.slane %v1395_v7, 5 }
 0x1f8   : > { %v1394_v61 = vrot.slane %v1392_v54, 4  ;;  %v2024_v1 = vshrl.u32 %v1983_v46, 16  ;;  %v2027_v2 = vshll.u32 %v1983_v46, 16  ;;  %v1695_v4 = vrot.slane %v1694_v59, 4  ;;  %v1364_v10 = vld [vmem:[#allocation3 + $0xc] sm:$0x1] }
 0x1f9   : > { %v1728_v52 = vsel %vm2979_vm2, %v1723_v53, %v1727_v45  ;;  %v1432_v63 = vsel %vm2979_vm2, %v1427_v56, %v1431_v51  ;;  %v1697_v5 = vshll.u32 %v1672_v57, 16  ;;  %v2017_v6 = vrot.slane %v2016_v60, 4  ;;  %v1984_v30 = vld [vmem:[#allocation3 + $0x24] sm:$0x1]  ;;  %v1365_v44 = vld [vmem:[#allocation3 + $0x10] sm:$0xf] }
 0x1fa   : > { %v1628_v37 = vld [vmem:[#allocation3 + $0x38] sm:$0xf]  ;;  %v2019_v9 = vshll.u32 %v1982_v58, 16  ;;  %v1434_v13 = vshrl.u32 %v1369_v62, 16  ;;  %v1437_v11 = vshll.u32 %v1369_v62, 16  ;;  %v1730_v15 = vshrl.u32 %v1677_v3, 16 }
 0x1fb   : > { %v1935_v55 = vld [vmem:[#allocation3 + $0x38] sm:$0xf]  ;;  %1650 = vrot.lane.b32.xlu0 %v1628_v37, %s2863_s15  ;;  %v1733_v17 = vshll.u32 %v1677_v3, 16  ;;  %v1626_v18 = vld [vmem:[#allocation3 + $0x28] sm:$0xf]  ;;  %v1398_v21 = vor.u32 %v1397_v0, %v1394_v61  ;;  %v2026_v23 = vrot.slane %v2024_v1, 4 }
 0x1fc   : > { %1956 = vrot.lane.b32.xlu1 %v1935_v55, %s2867_s8  ;;  %v1933_v19 = vld [vmem:[#allocation3 + $0x28] sm:$0xf]  ;;  %v2029_v24 = vrot.slane %v2027_v2, 5  ;;  %v1699_v26 = vrot.slane %v1697_v5, 5  ;;  %v2021_v27 = vrot.slane %v2019_v9, 5  ;;  %v1401_v29 = vshll.u32 %v1364_v10, 16 }
 0x1fd   : > { %v1436_v32 = vrot.slane %v1434_v13, 4  ;;  %v1439_v33 = vrot.slane %v1437_v11, 5  ;;  %v1732_v35 = vrot.slane %v1730_v15, 4  ;;  %v1735_v36 = vrot.slane %v1733_v17, 5  ;;  %v1370_v42 = vld [vmem:[#allocation3 + $0x24] sm:$0x1] }
 0x1fe   : > { %v1700_v38 = vsel %vm2979_vm2, %v1695_v4, %v1699_v26  ;;  %v2022_v39 = vsel %vm2979_vm2, %v2017_v6, %v2021_v27  ;;  %v1399_v40 = vrot.slane %v1398_v21, 4  ;;  %v2030_v41 = vor.u32 %v2029_v24, %v2026_v23  ;;  %v1678_v43 = vld [vmem:[#allocation3 + $0x24] sm:$0x1]  ;;  %v1673_v37 = vld [vmem:[#allocation3 + $0x10] sm:$0xf] }
 0x1ff   : > { %1803 = vrot.lane.b32.xlu0 %v1728_v52, %s2865_s30  ;;  %v1403_v47 = vrot.slane %v1401_v29, 5  ;;  %v2033_v48 = vshll.u32 %v1984_v30, 16  ;;  %v1440_v8 = vor.u32 %v1439_v33, %v1436_v32  ;;  %v1443_v49 = vshll.u32 %v1370_v42, 16  ;;  %v1936_v55 = vld [vmem:[#allocation3 + $0x40] sm:$0xf] }
 0x200   : > { %1495 = vrot.lane.b32.xlu1 %v1432_v63, %s2860_s12  ;;  %v1736_v53 = vor.u32 %v1735_v36, %v1732_v35  ;;  %v1739_v54 = vshll.u32 %v1678_v43, 16  ;;  %v2031_v7 = vrot.slane %v2030_v41, 4  ;;  %v1406_v45 = vshrl.u32 %v1365_v44, 16  ;;  %v1979_v62 = vld [vmem:[#allocation3 + $0x10] sm:$0xf] }
 0x201   : > { %v1404_v56 = vsel %vm2979_vm2, %v1399_v40, %v1403_v47  ;;  %v1409_v46 = vshll.u32 %v1365_v44, 16  ;;  %v2035_v51 = vrot.slane %v2033_v48, 5  ;;  %v1702_v57 = vshrl.u32 %v1673_v37, 16  ;;  %v1629_v0 = vld [vmem:[#allocation3 + $0x40] sm:$0xf] }
 0x202   : > { %v1705_v59 = vshll.u32 %v1673_v37, 16  ;;  %v1441_v60 = vrot.slane %v1440_v8, 4  ;;  %v1445_v52 = vrot.slane %v1443_v49, 5  ;;  %v1737_v58 = vrot.slane %v1736_v53, 4  ;;  %v1844_v1 = vld [vmem:[#allocation3 + $0x38] sm:$0xe] }
 0x203   : > { %1646 = vrot.lane.b32.xlu0 %v1626_v18, %s2863_s15  ;;  %v1741_v61 = vrot.slane %v1739_v54, 5  ;;  %v2036_v63 = vsel %vm2979_vm2, %v2031_v7, %v2035_v51  ;;  %v1366_v2 = vld [vmem:[#allocation3 + $0x14] sm:$0x1]  ;;  %v1408_v3 = vrot.slane %v1406_v45, 4  ;;  %v1411_v4 = vrot.slane %v1409_v46, 5 }
 0x204   : > { %1952 = vrot.lane.b32.xlu1 %v1933_v19, %s2867_s8  ;;  %v1845_v5 = vld [vmem:[#allocation3 + $0x3c] sm:$0x1]  ;;  %v1536_v6 = vld [vmem:[#allocation3 + $0x38] sm:$0xe]  ;;  %v1674_v10 = vld [vmem:[#allocation3 + $0x14] sm:$0x1]  ;;  %v1446_v18 = vsel %vm2979_vm2, %v1441_v60, %v1445_v52 }
 0x205   : > { %v1537_v9 = vld [vmem:[#allocation3 + $0x3c] sm:$0x1]  ;;  %v1704_v13 = vrot.slane %v1702_v57, 4  ;;  %v1707_v11 = vrot.slane %v1705_v59, 5  ;;  %v1996_v15 = vshrl.u32 %v1979_v62, 16  ;;  %v1999_v17 = vshll.u32 %v1979_v62, 16 }
 0x206   : > { %v1742_v19 = vsel %vm2979_vm2, %v1737_v58, %v1741_v61  ;;  %v1980_v21 = vld [vmem:[#allocation3 + $0x14] sm:$0x1]  ;;  %v2635_v23 = vrot.slane %v1844_v1, 9  ;;  %v1890_v24 = vrot.slane %v1845_v5, 5  ;;  %v2628_v26 = vrot.slane %v1536_v6, 9 }
 0x207   : > { %1799 = vrot.lane.b32.xlu0 %v1700_v38, %s2865_s30  ;;  %v1587_v27 = vrot.slane %v1537_v9, 5  ;;  %v1412_v29 = vor.u32 %v1411_v4, %v1408_v3  ;;  %v1415_v30 = vshll.u32 %v1366_v2, 16  ;;  %v1711_v32 = vshll.u32 %v1674_v10, 16  ;;  %v1934_v44 = vld [vmem:[#allocation3 + $0x30] sm:$0xf] }
 0x208   : > { %2109 = vrot.lane.b32.xlu1 %v2022_v39, %s2868_s9  ;;  %v1708_v33 = vor.u32 %v1707_v11, %v1704_v13  ;;  %v1998_v35 = vrot.slane %v1996_v15, 4  ;;  %v2001_v36 = vrot.slane %v1999_v17, 5  ;;  %v2005_v38 = vshll.u32 %v1980_v21, 16  ;;  %v1627_v47 = vld [vmem:[#allocation3 + $0x30] sm:$0xf] }
 0x209   : > { %v1891_v39 = vsel %vm3289_vm7, %v2635_v23, %v1890_v24  ;;  %v1588_v40 = vsel %vm3289_vm7, %v2628_v26, %v1587_v27  ;;  %v1413_v41 = vrot.slane %v1412_v29, 4  ;;  %v1417_v42 = vrot.slane %v1415_v30, 5  ;;  %v2146_v53 = vld [vmem:[#allocation3 + $0x28] sm:$0xe]  ;;  %v2147_v54 = vld [vmem:[#allocation3 + $0x2c] sm:$0x1] }
 0x20a   : > { %v1713_v43 = vrot.slane %v1711_v32, 5  ;;  %v1709_v48 = vrot.slane %v1708_v33, 4  ;;  %v2002_v8 = vor.u32 %v2001_v36, %v1998_v35  ;;  %v2007_v49 = vrot.slane %v2005_v38, 5  ;;  %v1840_v37 = vld [vmem:[#allocation3 + $0x28] sm:$0xe]  ;;  %v2786_v27 = vld [vmem:[%s3765_s3] sm:$0xff]  }
 0x20b   : > { %1958 = vrot.lane.b32.xlu0 %v1936_v55, %s2867_s8  ;;  %v1841_v55 = vld [vmem:[#allocation3 + $0x2c] sm:$0x1]  ;;  %v1683_v7 = vld [vmem:[#allocation3 + $0x38] sm:$0xf]  ;;  %v3485_v46 = vld [vmem:[#allocation3 + $0x30] sm:$0xe]  ;;  %v1418_v57 = vsel %vm2979_vm2, %v1413_v41, %v1417_v42  ;;  %2703 = vmatprep.subr.bf16.mxu1 %v2786_v27 }
 0x20c   : > { %1491 = vrot.lane.b32.xlu1 %v1404_v56, %s2860_s12  ;;  %v1532_v56 = vld [vmem:[#allocation3 + $0x28] sm:$0xe]  ;;  %v1533_v45 = vld [vmem:[#allocation3 + $0x2c] sm:$0x1]  ;;  %v1352_v51 = vld [vmem:[#allocation3 + $0x38] sm:$0xf]  ;;  %v1714_v59 = vsel %vm2979_vm2, %v1709_v48, %v1713_v43  ;;  %2704 = vmatpush3.bf16.msra.mxu1 %v2786_v27 }
 0x20d   : > { %v2003_v60 = vrot.slane %v2002_v8, 4  ;;  %v2640_v52 = vrot.slane %v2146_v53, 9  ;;  %1360 = vst.msk [vmem:[#allocation4 + $0x1c] sm:$0xf] %vm1122_vm14, %v1352_v51  ;;  %v1351_v58 = vld [vmem:[#allocation3 + $0x30] sm:$0xf] }
 0x20e   : > { %v2186_v61 = vrot.slane %v2147_v54, 5  ;;  %v2633_v62 = vrot.slane %v1840_v37, 9  ;;  %1359 = vst.msk [vmem:[#allocation4 + $0x18] sm:$0xf] %vm1122_vm14, %v1351_v58  ;;  %v1350_v1 = vld [vmem:[#allocation3 + $0x28] sm:$0xf] }
 0x20f   : > { %2111 = vrot.lane.b32.xlu0 %v2036_v63, %s2868_s9  ;;  %v1772_v63 = vshrl.u32 %v1683_v7, 16  ;;  %v1882_v2 = vrot.slane %v1841_v55, 5  ;;  %v2626_v3 = vrot.slane %v1532_v56, 9  ;;  %v1579_v4 = vrot.slane %v1533_v45, 5  ;;  %v1535_v5 = vld [vmem:[#allocation3 + $0x34] sm:$0x1] }
 0x210   : > { %1652 = vrot.lane.b32.xlu1 %v1629_v0, %s2863_s15  ;;  %v1775_v0 = vshll.u32 %v1683_v7, 16  ;;  %v2627_v6 = vrot.slane %v3485_v46, 9  ;;  %1358 = vst.msk [vmem:[#allocation4 + $0x14] sm:$0xf] %vm1122_vm14, %v1350_v1  ;;  %v1846_v9 = vld [vmem:[#allocation3 + $0x40] sm:$0xe]  ;;  %v2008_v11 = vsel %vm2979_vm2, %v2003_v60, %v2007_v49 }
 0x211   : > { %v1375_v10 = vld [vmem:[#allocation3 + $0x38] sm:$0xf]  ;;  %v1679_v13 = vld [vmem:[#allocation3 + $0x28] sm:$0xf]  ;;  %v1847_v15 = vld [vmem:[#allocation3 + $0x44] sm:$0x1] }
 0x212   : > { %v2148_v17 = vld [vmem:[#allocation3 + $0x30] sm:$0xe]  ;;  %v1583_v21 = vrot.slane %v1535_v5, 5  ;;  %v2149_v23 = vld [vmem:[#allocation3 + $0x34] sm:$0x1]  ;;  %v1774_v24 = vrot.slane %v1772_v63, 4 }
 0x213   : > { %1497 = vrot.lane.b32.xlu0 %v1446_v18, %s2860_s12  ;;  %v1989_v18 = vld [vmem:[#allocation3 + $0x38] sm:$0xf]  ;;  %v1777_v26 = vrot.slane %v1775_v0, 5  ;;  %v1476_v29 = vshrl.u32 %v1375_v10, 16  ;;  %v1479_v30 = vshll.u32 %v1375_v10, 16  ;;  %v1744_v32 = vshrl.u32 %v1679_v13, 16 }
 0x214   : > { %1805 = vrot.lane.b32.xlu1 %v1742_v19, %s2865_s30  ;;  %v2187_v19 = vsel %vm3289_vm7, %v2640_v52, %v2186_v61  ;;  %v1747_v33 = vshll.u32 %v1679_v13, 16  ;;  %v2636_v35 = vrot.slane %v1846_v9, 9  ;;  %v1894_v36 = vrot.slane %v1847_v15, 5  ;;  %v1842_v42 = vld [vmem:[#allocation3 + $0x30] sm:$0xe] }
 0x215   : > { %v2066_v38 = vshrl.u32 %v1989_v18, 16  ;;  %v2190_v41 = vrot.slane %v2149_v23, 5  ;;  %v1991_v43 = vld [vmem:[#allocation3 + $0x40] sm:$0xf]  ;;  %v1843_v48 = vld [vmem:[#allocation3 + $0x34] sm:$0x1]  ;;  %v1778_v49 = vor.u32 %v1777_v26, %v1774_v24  ;;  %v1584_v60 = vsel %vm3289_vm7, %v2627_v6, %v1583_v21 }
 0x216   : > { %v1684_v8 = vld [vmem:[#allocation3 + $0x3c] sm:$0x1]  ;;  %v1985_v53 = vld [vmem:[#allocation3 + $0x28] sm:$0xf]  ;;  %v1478_v37 = vrot.slane %v1476_v29, 4  ;;  %v1481_v55 = vrot.slane %v1479_v30, 5  ;;  %v1895_v63 = vsel %vm3289_vm7, %v2636_v35, %v1894_v36 }
 0x217   : > { %1908 = vrot.lane.b32.xlu0 %v1891_v39, %s2869_s14  ;;  %v2069_v39 = vshll.u32 %v1989_v18, 16  ;;  %v1376_v54 = vld [vmem:[#allocation3 + $0x3c] sm:$0x1]  ;;  %v1746_v56 = vrot.slane %v1744_v32, 4  ;;  %v1749_v7 = vrot.slane %v1747_v33, 5  ;;  %v2068_v46 = vrot.slane %v2066_v38, 4 }
 0x218   : > { %1603 = vrot.lane.b32.xlu1 %v1588_v40, %s2861_s13  ;;  %v2641_v40 = vrot.slane %v2148_v17, 9  ;;  %v1680_v45 = vld [vmem:[#allocation3 + $0x2c] sm:$0x1]  ;;  %v2634_v52 = vrot.slane %v1842_v42, 9  ;;  %v2038_v58 = vshrl.u32 %v1985_v53, 16  ;;  %v2041_v61 = vshll.u32 %v1985_v53, 16 }
 0x219   : > { %v2071_v51 = vrot.slane %v2069_v39, 5  ;;  %v1886_v1 = vrot.slane %v1843_v48, 5  ;;  %v1482_v5 = vor.u32 %v1481_v55, %v1478_v37  ;;  %v1485_v9 = vshll.u32 %v1376_v54, 16  ;;  %v1371_v10 = vld [vmem:[#allocation3 + $0x28] sm:$0xf]  ;;  %v2788_v27 = vld [vmem:[%s3765_s3 + $0x10] sm:$0xff]  }
 0x21a   : > { %v2191_v0 = vsel %vm3289_vm7, %v2641_v40, %v2190_v41  ;;  %v1753_v6 = vshll.u32 %v1680_v45, 16  ;;  %v1750_v13 = vor.u32 %v1749_v7, %v1746_v56  ;;  %v1992_v17 = vld [vmem:[#allocation3 + $0x44] sm:$0x1]  ;;  %v2040_v21 = vrot.slane %v2038_v58, 4  ;;  %v1987_v40 = vld [vmem:[#allocation3 + $0x30] sm:$0xf] }
 0x21b   : > { %1954 = vrot.lane.b32.xlu0 %v1934_v44, %s2867_s8  ;;  %v1883_v44 = vsel %vm3289_vm7, %v2633_v62, %v1882_v2  ;;  %v2787_v62 = vld [vmem:[%s3765_s3 + $0x8] sm:$0xff]   ;;  %v1781_v2 = vshll.u32 %v1684_v8, 16  ;;  %v2072_v15 = vor.u32 %v2071_v51, %v2068_v46  ;;  %v2043_v23 = vrot.slane %v2041_v61, 5  ;;  %v2789_v48 = vld [vmem:[%s3765_s3 + $0x18] sm:$0xff]   ;;  %s2798_s8 = sshll.u32 %s2872_s7, 4  ;;  %s2799_s8 = int_to_ptr.vmem [resolvable:$false] %s2798_s8 }
 0x21c   : > { %1648 = vrot.lane.b32.xlu1 %v1627_v47, %s2863_s15  ;;  %v1580_v47 = vsel %vm3289_vm7, %v2626_v3, %v1579_v4  ;;  %v1373_v3 = vld [vmem:[#allocation3 + $0x30] sm:$0xf]  ;;  %v1779_v4 = vrot.slane %v1778_v49, 4  ;;  %2705 = vmatprep.subr.bf16.mxu1 %v2787_v62  ;;  %v1887_v29 = vsel %vm3289_vm7, %v2634_v52, %v1886_v1  ;;  %v1448_v32 = vshrl.u32 %v1371_v10, 16  ;;  %v1986_v49 = vld [vmem:[#allocation3 + $0x2c] sm:$0x1]  ;;  %v3539_v52 = vpop.permute.xlu1 %1960 }
 0x21d   : > { %v1462_v24 = vshrl.u32 %v1373_v3, 16  ;;  %v1465_v26 = vshll.u32 %v1373_v3, 16  ;;  %2706 = vmatpush3.bf16.msra.mxu1 %v2787_v62  ;;  %v1783_v30 = vrot.slane %v1781_v2, 5  ;;  %v1451_v33 = vshll.u32 %v1371_v10, 16  ;;  %v1681_v62 = vld [vmem:[#allocation3 + $0x30] sm:$0xf] }
 0x21e   : > { %v1483_v35 = vrot.slane %v1482_v5, 4  ;;  %v1487_v36 = vrot.slane %v1485_v9, 5  ;;  %v1755_v38 = vrot.slane %v1753_v6, 5  ;;  %2707 = vmatprep.subr.bf16.mxu1 %v2788_v27  ;;  %v1751_v42 = vrot.slane %v1750_v13, 4  ;;  %v1374_v3 = vld [vmem:[#allocation3 + $0x34] sm:$0x1] }
 0x21f   : > { %1493 = vrot.lane.b32.xlu0 %v1418_v57, %s2860_s12  ;;  %v2080_v57 = vshrl.u32 %v1991_v43, 16  ;;  %v1784_v41 = vsel %vm2979_vm2, %v1779_v4, %v1783_v30  ;;  %v2044_v53 = vor.u32 %v2043_v23, %v2040_v21  ;;  %v1464_v54 = vrot.slane %v1462_v24, 4  ;;  %v1372_v9 = vld [vmem:[#allocation3 + $0x2c] sm:$0x1]  ;;  %s2800_s10 = scalar_lea.vmem %s2799_s8, 2048 }
 0x220   : > { %1801 = vrot.lane.b32.xlu1 %v1714_v59, %s2865_s30  ;;  %v2083_v59 = vshll.u32 %v1991_v43, 16  ;;  %v2073_v43 = vrot.slane %v2072_v15, 4  ;;  %v1467_v37 = vrot.slane %v1465_v26, 5  ;;  %v1450_v56 = vrot.slane %v1448_v32, 4  ;;  %v2790_v26 = vld [vmem:[%s3765_s3 + $0x20] ss:$0 sps:$4 sm:$0xff]  }
 0x221   : > { %v2082_v18 = vrot.slane %v2080_v57, 4  ;;  %2708 = vmatpush3.bf16.msra.mxu1 %v2788_v27  ;;  %v1453_v7 = vrot.slane %v1451_v33, 5  ;;  %v2052_v45 = vshrl.u32 %v1987_v40, 16  ;;  %v2055_v46 = vshll.u32 %v1987_v40, 16  ;;  %v3555_v27 = vpop.permute.xlu1 %2121  ;;  %v1988_v33 = vld [vmem:[#allocation3 + $0x34] sm:$0x1] }
 0x222   : > { %2709 = vmatprep.subr.bf16.mxu1 %v2789_v48  ;;  %v1488_v51 = vsel %vm2979_vm2, %v1483_v35, %v1487_v36  ;;  %v2047_v61 = vshll.u32 %v1986_v49, 16  ;;  %v2045_v2 = vrot.slane %v2044_v53, 4  ;;  %v1468_v5 = vor.u32 %v1467_v37, %v1464_v54  ;;  %v1686_v36 = vld [vmem:[#allocation3 + $0x44] sm:$0x1]  ;;  %v2152_v37 = vld [vmem:[#allocation3 + $0x40] sm:$0xe] }
 0x223   : > { %2107 = vrot.lane.b32.xlu0 %v2008_v11, %s2868_s9  ;;  %v1990_v11 = vld [vmem:[#allocation3 + $0x3c] sm:$0x1]  ;;  %v1454_v6 = vor.u32 %v1453_v7, %v1450_v56  ;;  %v2054_v10 = vrot.slane %v2052_v45, 4  ;;  %v2057_v13 = vrot.slane %v2055_v46, 5  ;;  %v1471_v21 = vshll.u32 %v1374_v3, 16 }
 0x224   : > { %2210 = vrot.lane.b32.xlu1 %v2187_v19, %s2870_s16  ;;  %v2085_v19 = vrot.slane %v2083_v59, 5  ;;  %v2075_v39 = vshll.u32 %v1990_v11, 16  ;;  %v1457_v24 = vshll.u32 %v1372_v9, 16  ;;  %v1469_v30 = vrot.slane %v1468_v5, 4  ;;  %v2153_v46 = vld [vmem:[#allocation3 + $0x44] sm:$0x1] }
 0x225   : > { %2710 = vmatpush3.bf16.msra.mxu1 %v2789_v48  ;;  %v1455_v32 = vrot.slane %v1454_v6, 4  ;;  %v2058_v35 = vor.u32 %v2057_v13, %v2054_v10  ;;  %v2154_v5 = vld [vmem:[#allocation3 + $0x48] sm:$0xe]  ;;  %v2155_v9 = vld [vmem:[#allocation3 + $0x4c] sm:$0x1]  ;;  %vm1970_vm14 = vcmask 454016  }
 0x226   : > { %v2086_v8 = vor.u32 %v2085_v19, %v2082_v18  ;;  %v2077_v57 = vrot.slane %v2075_v39, 5  ;;  %v1761_v18 = vshll.u32 %v1681_v62, 16  ;;  %v2049_v19 = vrot.slane %v2047_v61, 5  ;;  %2722 = vmatprep.subr.msk.bf16.mxu1 %vm2321_vm12, %v2790_v26 }
 0x227   : > { %1904 = vrot.lane.b32.xlu0 %v1883_v44, %s2869_s14  ;;  %v2089_v44 = vshll.u32 %v1992_v17, 16  ;;  %v1758_v17 = vshrl.u32 %v1681_v62, 16  ;;  %v2059_v53 = vrot.slane %v2058_v35, 4  ;;  %v2198_v62 = vrot.slane %v2153_v46, 5 }
 0x228   : > { %1599 = vrot.lane.b32.xlu1 %v1580_v47, %s2861_s13  ;;  %v1685_v47 = vld [vmem:[#allocation3 + $0x40] sm:$0xf]  ;;  %v2087_v1 = vrot.slane %v2086_v8, 4  ;;  %v1763_v40 = vrot.slane %v1761_v18, 5  ;;  %v1682_v8 = vld [vmem:[#allocation3 + $0x34] sm:$0x1] }
 0x229   : > { %v1786_v59 = vshrl.u32 %v1685_v47, 16  ;;  %v2091_v58 = vrot.slane %v2089_v44, 5  ;;  %v1760_v39 = vrot.slane %v1758_v17, 4  ;;  %v2061_v44 = vshll.u32 %v1988_v33, 16 }
 0x22a   : > { %v2202_v17 = vrot.slane %v2155_v9, 5  ;;  %vm2438_vm3 = vcmask 64512  }
 0x22b   : > { %1601 = vrot.lane.b32.xlu0 %v1584_v60, %s2861_s13  ;;  %v1789_v60 = vshll.u32 %v1685_v47, 16  ;;  %v1788_v11 = vrot.slane %v1786_v59, 4  ;;  %v2092_v23 = vsel %vm2979_vm2, %v2087_v1, %v2091_v58  ;;  %v1795_v47 = vshll.u32 %v1686_v36, 16  ;;  %v2151_v1 = vld [vmem:[#allocation3 + $0x3c] sm:$0x1] }
 0x22c   : > { %1910 = vrot.lane.b32.xlu1 %v1895_v63, %s2869_s14  ;;  %v1756_v63 = vsel %vm2979_vm2, %v1751_v42, %v1755_v38  ;;  %v1473_v42 = vrot.slane %v1471_v21, 5  ;;  %v1764_v56 = vor.u32 %v1763_v40, %v1760_v39  ;;  %v1767_v59 = vshll.u32 %v1682_v8, 16 }
 0x22d   : > { %v1791_v15 = vrot.slane %v1789_v60, 5  ;;  %v2643_v60 = vrot.slane %v2152_v37, 9 }
 0x22e   : > { %v1474_v48 = vsel %vm2979_vm2, %v1469_v30, %v1473_v42 }
 0x22f   : > { %2212 = vrot.lane.b32.xlu0 %v2191_v0, %s2870_s16  ;;  %v2078_v0 = vsel %vm2979_vm2, %v2073_v43, %v2077_v57  ;;  %v1792_v38 = vor.u32 %v1791_v15, %v1788_v11  ;;  %v1459_v43 = vrot.slane %v1457_v24, 5  ;;  %v1797_v57 = vrot.slane %v1795_v47, 5 }
 0x230   : > { %1906 = vrot.lane.b32.xlu1 %v1887_v29, %s2869_s14  ;;  %v2050_v29 = vsel %vm2979_vm2, %v2045_v2, %v2049_v19  ;;  %v1769_v2 = vrot.slane %v1767_v59, 5  ;;  %v2199_v6 = vsel %vm3289_vm7, %v2643_v60, %v2198_v62  ;;  %v2194_v11 = vrot.slane %v2151_v1, 5 }
 0x231   : > { %v1460_v49 = vsel %vm2979_vm2, %v1455_v32, %v1459_v43  ;;  %v1793_v54 = vrot.slane %v1792_v38, 4  ;;  %v3565_v7 = vpop.permute.xlu1 %1948  ;;  %v2644_v15 = vrot.slane %v2154_v5, 9 }
 0x232   : > { %v3535_v55 = vpop.permute.xlu0 %1642 }
 0x233   : > { %1811 = vrot.lane.b32.xlu0 %v1784_v41, %s2865_s30  ;;  %v2323_v41 = vsel %vm2321_vm12, %v2790_v26, 0  ;;  %v1798_v61 = vsel %vm2979_vm2, %v1793_v54, %v1797_v57  ;;  %v2203_v31 = vsel %vm3289_vm7, %v2644_v15, %v2202_v17  ;;  %v2645_v15 = vld [vmem:[%s3766_s4] ss:$0 sm:$0xff] }
 0x234   : > { %1503 = vrot.lane.b32.xlu1 %v1488_v51, %s2860_s12  ;;  %2712 = vmatpush3.bf16.msra.mxu1 %v2323_v41  ;;  %v2063_v51 = vrot.slane %v2061_v44, 5 }
 0x235   : > { %v1645_v3 = vpop.permute.xlu1 %1644 }
 0x236   : > { %v1639_v4 = vpop.permute.xlu0 %1638  ;;  %v2064_v58 = vsel %vm2979_vm2, %v2059_v53, %v2063_v51 }
 0x237   : > { %1663 = vst.msk [vmem:[#allocation4] sm:$0xf] %vm1662_vm11, %v1639_v4  ;;  %1807 = vrot.lane.b32.xlu0 %v1756_v63, %s2865_s30  ;;  %v1765_v63 = vrot.slane %v1764_v56, 4 }
 0x238   : > { %2117 = vrot.lane.b32.xlu1 %v2078_v0, %s2868_s9  ;;  %v2150_v0 = vld [vmem:[#allocation3 + $0x38] sm:$0xe] }
 0x239   : > { %v1770_v10 = vsel %vm2979_vm2, %v1765_v63, %v1769_v2  ;;  %v2642_v13 = vrot.slane %v2150_v0, 9  ;;  %v1596_v19 = vpop.permute.xlu1 %1595  ;;  %vm1823_vm2 = vcmask 322816  }
 0x23a   : > { %v3567_v45 = vpop.permute.xlu0 %1950 }
 0x23b   : > { %2119 = vrot.lane.b32.xlu0 %v2092_v23, %s2868_s9  ;;  %v2195_v18 = vsel %vm3289_vm7, %v2642_v13, %v2194_v11 }
 0x23c   : > { %2113 = vrot.lane.b32.xlu1 %v2050_v29, %s2868_s9 }
 0x23d   : > { %v1641_v23 = vpop.permute.xlu1 %1640 }
 0x23e   : > { %v3577_v4 = vpop.permute.xlu0 %1900 }
 0x23f   : > { %1501 = vrot.lane.b32.xlu0 %v1474_v48, %s2860_s12 }
 0x240   : > { %1499 = vrot.lane.b32.xlu1 %v1460_v49, %s2860_s12 }
 0x241   : > { %v3595_v26 = vpop.permute.xlu1 %2206 }
 0x242   : > { %v1947_v21 = vpop.permute.xlu0 %1946 }
 0x243   : > { %2115 = vrot.lane.b32.xlu0 %v2064_v58, %s2868_s9  ;;  %s2871_s9 = smov 120  }
 0x244   : > { %1813 = vrot.lane.b32.xlu1 %v1798_v61, %s2865_s30 }
 0x245   : > { %v1592_v50 = vpop.permute.xlu1 %1591 }
 0x246   : > { %v1897_v24 = vpop.permute.xlu0 %1896 }
 0x247   : > { %2216 = vrot.lane.b32.xlu0 %v2199_v6, %s2870_s16 }
 0x248   : > { %1809 = vrot.lane.b32.xlu1 %v1770_v10, %s2865_s30  ;;  %s215_s30 = sand.u32 1, %s2848_s19  }
 0x249   : > { %s3720_s22 = scalar_lea.sflag [#allocation6], %s215_s30 }
 0x24a   : > { %v3597_v29 = vpop.permute.xlu0 %2208 }
 0x24b   : > { %2398 = vrot.lane.b32.xlu0 %v3325_v14, %s2871_s9  ;;  %v1903_v14 = vpop.permute.xlu1 %1902 }
 0x24c   : > { %2214 = vrot.lane.b32.xlu1 %v2195_v18, %s2870_s16 }
 0x24f   : > { %2402 = vrot.lane.b32.xlu0 %v3322_v12, %s2871_s9  ;;  %v1598_v12 = vpop.permute.xlu0 %1597  ;;  %v1899_v32 = vpop.permute.xlu1 %1898 }
 0x250   : > { %2218 = vrot.lane.b32.xlu1 %v2203_v31, %s2870_s16  ;;  %s2527_s16 = sshll.u32 %s215_s30, 6 }
 0x251   : > { %s3691_s15 = scalar_lea.vmem [#allocation5], %s2527_s16 }
 0x252   : > { %s2461_s23 = sshll.u32 %s3691_s15, 4  ;;  %s3712_s23 = int_to_ptr.vmem [resolvable:$true] %s2461_s23 }
 0x253   : > { %2406 = vrot.lane.b32.xlu0 %v3409_v25, %s2871_s9  ;;  %v1594_v30 = vpop.permute.xlu0 %1593  ;;  %s2794_s13 = scalar_lea.vmem %s3712_s23, 1024  ;;  %p2801_p0 = scmp.lt.s32.totalorder %s3712_s23, %s2799_s8 }
 0x254   : > { %2400 = vrot.lane.b32.xlu1 %v3333_v20, %s2871_s9  ;;  %p2795_p11 = scmp.ne.s32.totalorder %s3712_s23, %s2794_s13  ;;  %p2802_p1 = scmp.lt.s32.totalorder %s2800_s10, %s2794_s13 }
 0x256   : > { %p2796_p12 = pnand %p2795_p11, %p2942_p5  ;;  %p2803_p2 = por %p2802_p1, %p2801_p0 }
 0x257   : > { %2410 = vrot.lane.b32.xlu0 %v3406_v22, %s2871_s9  ;;  %v2205_v25 = vpop.permute.xlu0 %2204 }
 0x258   : > { %2404 = vrot.lane.b32.xlu1 %v3329_v16, %s2871_s9  ;;  %p2797_p13 = pneg %p2796_p12 }
 0x25a   : > { %p2804_p3 = pnand %p2803_p2, %p2797_p13 }
 0x25c   : > { %2408 = vrot.lane.b32.xlu1 %v3417_v34, %s2871_s9 }
 0x260   : > { %2412 = vrot.lane.b32.xlu1 %v3413_v28, %s2871_s9 }
 0x26d   : > { %v3603_v33 = vpop.permute.xlu0 %1650 }
 0x26e   : > { %v3605_v20 = vpop.permute.xlu1 %1956 }
 0x271   : > { %v1804_v35 = vpop.permute.xlu0 %1803 }
 0x272   : > { %v1496_v36 = vpop.permute.xlu1 %1495 }
 0x273   : > { %1517 = vst.msk [vmem:[#allocation4 + $0xc] sm:$0xf] %vm1513_vm8, %v1496_v36 }
 0x274   : > { %1617 = vst.msk [vmem:[#allocation4 + $0xc] sm:$0xf] %vm1613_vm9, %v1596_v19 }
 0x275   : > { %1666 = vst.msk [vmem:[#allocation4 + $0xc] sm:$0xf] %vm1662_vm11, %v1645_v3  ;;  %v1647_v16 = vpop.permute.xlu0 %1646 }
 0x276   : > { %v1953_v22 = vpop.permute.xlu1 %1952 }
 0x279   : > { %v1800_v28 = vpop.permute.xlu0 %1799 }
 0x27a   : > { %v2110_v34 = vpop.permute.xlu1 %2109  ;;  %1824 = vst.msk [vmem:[#allocation4] sm:$0xf] %vm1823_vm2, %v1800_v28 }
 0x27b   : > { %1921 = vst.msk [vmem:[#allocation4] sm:$0xf] %vm1920_vm13, %v1897_v24 }
 0x27c   : > { %1971 = vst.msk [vmem:[#allocation4] sm:$0xf] %vm1970_vm14, %v1947_v21 }
 0x27d   : > { %v3613_v38 = vpop.permute.xlu0 %1958 }
 0x27e   : > { %v1492_v39 = vpop.permute.xlu1 %1491 }
 0x27f   : > { %1515 = vst.msk [vmem:[#allocation4 + $0x4] sm:$0xf] %vm1513_vm8, %v1492_v39 }
 0x280   : > { %1615 = vst.msk [vmem:[#allocation4 + $0x4] sm:$0xf] %vm1613_vm9, %v1592_v50 }
 0x281   : > { %1664 = vst.msk [vmem:[#allocation4 + $0x4] sm:$0xf] %vm1662_vm11, %v1641_v23  ;;  %v2112_v40 = vpop.permute.xlu0 %2111 }
 0x282   : > { %v1653_v41 = vpop.permute.xlu1 %1652 }
 0x285   : > { %v1498_v42 = vpop.permute.xlu0 %1497 }
 0x286   : > { %v1806_v43 = vpop.permute.xlu1 %1805  ;;  %1518 = vst.msk [vmem:[#allocation4 + $0x10] sm:$0xf] %vm1513_vm8, %v1498_v42 }
 0x287   : > { %1827 = vst.msk [vmem:[#allocation4 + $0xc] sm:$0xf] %vm1823_vm2, %v1806_v43 }
 0x288   : > { %1618 = vst.msk [vmem:[#allocation4 + $0x10] sm:$0xf] %vm1613_vm9, %v1598_v12 }
 0x289   : > { %1924 = vst.msk [vmem:[#allocation4 + $0xc] sm:$0xf] %vm1920_vm13, %v1903_v14  ;;  %v1909_v44 = vpop.permute.xlu0 %1908 }
 0x28a   : > { %1667 = vst.msk [vmem:[#allocation4 + $0x10] sm:$0xf] %vm1662_vm11, %v1647_v16  ;;  %v1604_v47 = vpop.permute.xlu1 %1603 }
 0x28b   : > { %1974 = vst.msk [vmem:[#allocation4 + $0xc] sm:$0xf] %vm1970_vm14, %v1953_v22 }
 0x28d   : > { %v1955_v48 = vpop.permute.xlu0 %1954 }
 0x28e   : > { %v1649_v8 = vpop.permute.xlu1 %1648 }
 0x291   : > { %v1494_v49 = vpop.permute.xlu0 %1493 }
 0x292   : > { %v1802_v53 = vpop.permute.xlu1 %1801  ;;  %1516 = vst.msk [vmem:[#allocation4 + $0x8] sm:$0xf] %vm1513_vm8, %v1494_v49 }
 0x293   : > { %1825 = vst.msk [vmem:[#allocation4 + $0x4] sm:$0xf] %vm1823_vm2, %v1802_v53 }
 0x294   : > { %1616 = vst.msk [vmem:[#allocation4 + $0x8] sm:$0xf] %vm1613_vm9, %v1594_v30 }
 0x295   : > { %1922 = vst.msk [vmem:[#allocation4 + $0x4] sm:$0xf] %vm1920_vm13, %v1899_v32  ;;  %v2108_v54 = vpop.permute.xlu0 %2107 }
 0x296   : > { %1665 = vst.msk [vmem:[#allocation4 + $0x8] sm:$0xf] %vm1662_vm11, %v3535_v55  ;;  %v2211_v37 = vpop.permute.xlu1 %2210 }
 0x297   : > { %1972 = vst.msk [vmem:[#allocation4 + $0x4] sm:$0xf] %vm1970_vm14, %v3565_v7 }
 0x298   : > { %1826 = vst.msk [vmem:[#allocation4 + $0x8] sm:$0xf] %vm1823_vm2, %v1804_v35 }
 0x299   : > { %2133 = vst.msk [vmem:[#allocation4 + $0x4] sm:$0xf] %vm2131_vm15, %v2110_v34  ;;  %2132 = vst.msk [vmem:[#allocation4] sm:$0xf] %vm2131_vm15, %v2108_v54  ;;  %v1905_v55 = vpop.permute.xlu0 %1904 }
 0x29a   : > { %1923 = vst.msk [vmem:[#allocation4 + $0x8] sm:$0xf] %vm1920_vm13, %v3577_v4  ;;  %v1600_v56 = vpop.permute.xlu1 %1599 }
 0x29b   : > { %2230 = vst.msk [vmem:[#allocation4 + $0x4] sm:$0xf] %vm2228_vm0, %v3595_v26  ;;  %2229 = vst.msk [vmem:[#allocation4] sm:$0xf] %vm2228_vm0, %v2205_v25 }
 0x29c   : > { %1973 = vst.msk [vmem:[#allocation4 + $0x8] sm:$0xf] %vm1970_vm14, %v3567_v45 }
 0x29d   : > { %2134 = vst.msk [vmem:[#allocation4 + $0x8] sm:$0xf] %vm2131_vm15, %v2112_v40  ;;  %v1602_v7 = vpop.permute.xlu0 %1601 }
 0x29e   : > { %2231 = vst.msk [vmem:[#allocation4 + $0x8] sm:$0xf] %vm2228_vm0, %v3597_v29  ;;  %v1911_v46 = vpop.permute.xlu1 %1910 }
 0x2a1   : > { %v2213_v57 = vpop.permute.xlu0 %2212 }
 0x2a2   : > { %v2785_v51 = vld [vmem:[#allocation4] sm:$0xff]   ;;  %v1907_v59 = vpop.permute.xlu1 %1906 }
 0x2a3   : > { %2713 = vmatprep.mubr.msk.bf16.mxu1 %vm2308_vm1, %v2785_v51 }
 0x2a5   : > { %v1812_v60 = vpop.permute.xlu0 %1811 }
 0x2a6   : > { %v1504_v58 = vpop.permute.xlu1 %1503 }
 0x2a7   : > { %1521 = vst.msk [vmem:[#allocation4 + $0x1c] sm:$0xf] %vm1513_vm8, %v1504_v58 }
 0x2a8   : > { %1621 = vst.msk [vmem:[#allocation4 + $0x1c] sm:$0xf] %vm1613_vm9, %v1604_v47 }
 0x2a9   : > { %1670 = vst.msk [vmem:[#allocation4 + $0x1c] sm:$0xf] %vm1662_vm11, %v1653_v41  ;;  %v1808_v45 = vpop.permute.xlu0 %1807 }
 0x2aa   : > { %v2118_v61 = vpop.permute.xlu1 %2117  ;;  %1828 = vst.msk [vmem:[#allocation4 + $0x10] sm:$0xf] %vm1823_vm2, %v1808_v45 }
 0x2ab   : > { %1925 = vst.msk [vmem:[#allocation4 + $0x10] sm:$0xf] %vm1920_vm13, %v1905_v55 }
 0x2ac   : > { %1975 = vst.msk [vmem:[#allocation4 + $0x10] sm:$0xf] %vm1970_vm14, %v1955_v48 }
 0x2ad   : > { %v2120_v62 = vpop.permute.xlu0 %2119 }
 0x2ae   : > { %v2114_v63 = vpop.permute.xlu1 %2113 }
 0x2af   : > { %2135 = vst.msk [vmem:[#allocation4 + $0xc] sm:$0xf] %vm2131_vm15, %v2114_v63 }
 0x2b0   : > { %2232 = vst.msk [vmem:[#allocation4 + $0xc] sm:$0xf] %vm2228_vm0, %v2211_v37 }
 0x2b1   : > { %v1502_v0 = vpop.permute.xlu0 %1501 }
 0x2b2   : > { %v1500_v1 = vpop.permute.xlu1 %1499  ;;  %1520 = vst.msk [vmem:[#allocation4 + $0x18] sm:$0xf] %vm1513_vm8, %v1502_v0 }
 0x2b3   : > { %1519 = vst.msk [vmem:[#allocation4 + $0x14] sm:$0xf] %vm1513_vm8, %v1500_v1 }
 0x2b4   : > { %1620 = vst.msk [vmem:[#allocation4 + $0x18] sm:$0xf] %vm1613_vm9, %v1602_v7  ;;  %1619 = vst.msk [vmem:[#allocation4 + $0x14] sm:$0xf] %vm1613_vm9, %v1600_v56 }
 0x2b5   : > { %1669 = vst.msk [vmem:[#allocation4 + $0x18] sm:$0xf] %vm1662_vm11, %v3603_v33  ;;  %1668 = vst.msk [vmem:[#allocation4 + $0x14] sm:$0xf] %vm1662_vm11, %v1649_v8  ;;  %v2116_v2 = vpop.permute.xlu0 %2115 }
 0x2b6   : > { %1830 = vst.msk [vmem:[#allocation4 + $0x18] sm:$0xf] %vm1823_vm2, %v1812_v60  ;;  %v1814_v3 = vpop.permute.xlu1 %1813 }
 0x2b7   : > { %1927 = vst.msk [vmem:[#allocation4 + $0x18] sm:$0xf] %vm1920_vm13, %v1909_v44  ;;  %v2791_v4 = vld [vmem:[#allocation4 + $0x8] sm:$0xff]  }
 0x2b8   : > { %2136 = vst.msk [vmem:[#allocation4 + $0x10] sm:$0xf] %vm2131_vm15, %v2116_v2  ;;  %2714 = vmatmul.mubr.msk.bf16.vlgmr.msra.gmra.mrb[0].mxu1 %vm2308_vm1, %v2791_v4 }
 0x2b9   : > { %1831 = vst.msk [vmem:[#allocation4 + $0x1c] sm:$0xf] %vm1823_vm2, %v1814_v3  ;;  %v2217_v5 = vpop.permute.xlu0 %2216 }
 0x2ba   : > { %1977 = vst.msk [vmem:[#allocation4 + $0x18] sm:$0xf] %vm1970_vm14, %v3613_v38  ;;  %v1810_v9 = vpop.permute.xlu1 %1809 }
 0x2bb   : > { %2233 = vst.msk [vmem:[#allocation4 + $0x10] sm:$0xf] %vm2228_vm0, %v2213_v57 }
 0x2bc   : > { %1928 = vst.msk [vmem:[#allocation4 + $0x1c] sm:$0xf] %vm1920_vm13, %v1911_v46 }
 0x2bd   : > { %2138 = vst.msk [vmem:[#allocation4 + $0x18] sm:$0xf] %vm2131_vm15, %v2120_v62  ;;  %v2399_v13 = vpop.permute.xlu0 %2398 }
 0x2be   : > { %1978 = vst.msk [vmem:[#allocation4 + $0x1c] sm:$0xf] %vm1970_vm14, %v3539_v52  ;;  %v2215_v52 = vpop.permute.xlu1 %2214 }
 0x2bf   : > { %2139 = vst.msk [vmem:[#allocation4 + $0x1c] sm:$0xf] %vm2131_vm15, %v3555_v27 }
 0x2c0   : > { %2235 = vst.msk [vmem:[#allocation4 + $0x18] sm:$0xf] %vm2228_vm0, %v2217_v5 }
 0x2c1   : > { %1829 = vst.msk [vmem:[#allocation4 + $0x14] sm:$0xf] %vm1823_vm2, %v1810_v9  ;;  %v2403_v21 = vpop.permute.xlu0 %2402 }
 0x2c2   : > { %1926 = vst.msk [vmem:[#allocation4 + $0x14] sm:$0xf] %vm1920_vm13, %v1907_v59  ;;  %v2219_v6 = vpop.permute.xlu1 %2218 }
 0x2c3   : > { %1976 = vst.msk [vmem:[#allocation4 + $0x14] sm:$0xf] %vm1970_vm14, %v3605_v20 }
 0x2c4   : > { %2137 = vst.msk [vmem:[#allocation4 + $0x14] sm:$0xf] %vm2131_vm15, %v2118_v61 }
 0x2c5   : > { %2234 = vst.msk [vmem:[#allocation4 + $0x14] sm:$0xf] %vm2228_vm0, %v2215_v52  ;;  %2236 = vst.msk [vmem:[#allocation4 + $0x1c] sm:$0xf] %vm2228_vm0, %v2219_v6  ;;  %v2407_v36 = vpop.permute.xlu0 %2406 }
 0x2c6   : > { %v2401_v11 = vpop.permute.xlu1 %2400 }
 0x2c9   : > { %v2411_v38 = vpop.permute.xlu0 %2410 }
 0x2ca   : > { %v2405_v50 = vpop.permute.xlu1 %2404 }
 0x2cc   : > { %v2792_v27 = vld [vmem:[#allocation4 + $0x10] sm:$0xff]   ;;  %v2793_v10 = vld [vmem:[#allocation4 + $0x18] sm:$0xff]  }
 0x2cd   : > { %2717 = vmatprep.mubr.msk.bf16.mxu1 %vm2308_vm1, %v2792_v27 }
 0x2ce   : > { %2718 = vmatmul.mubr.msk.bf16.gmra.mrb[4].mxu1 %vm2308_vm1, %v2793_v10  ;;  %v2409_v16 = vpop.permute.xlu1 %2408 }
 0x2d2   : > { %v2413_v44 = vpop.permute.xlu1 %2412 }
 0x38b   : > { %v2715_v17 = vpop.f32.mrb[0].mxu1 }
 0x38c   : > { %v2368_v18 = vadd.f32 %v2715_v17, %v2645_v15  ;;  %v2359_v19 = vpop.f32.mrb[1].mxu1 }
 0x38d   : > { %v2360_v31 = vadd.f32 %v2645_v15, %v2359_v19  ;;  %v2716_v23 = vpop.f32.mrb[2].mxu1 }
 0x38e   : > { %v2424_v24 = vadd.f32 %v2403_v21, %v2368_v18  ;;  %v2371_v26 = vadd.f32 %v2716_v23, %v2645_v15  ;;  %v2362_v29 = vpop.f32.mrb[3].mxu1 }
 0x38f   : > { %v2422_v12 = vadd.f32 %v2399_v13, %v2360_v31  ;;  %v2363_v14 = vadd.f32 %v2645_v15, %v2362_v29 }
 0x390   : > { %v2432_v30 = vmax.f32 %v2424_v24, 0.0  ;;  %v2425_v32 = vadd.f32 %v2405_v50, %v2371_v26 }
 0x391   : > { %v2430_v25 = vmax.f32 %v2422_v12, 0.0  ;;  %v2423_v33 = vadd.f32 %v2401_v11, %v2363_v14 }
 0x392   : > { %2441 = vst.msk [vmem:[%s3691_s15 + $0x10] sm:$0xff] %vm2438_vm3, %v2432_v30  ;;  %v2433_v20 = vmax.f32 %v2425_v32, 0.0 }
 0x393   : > { %2439 = vst.msk [vmem:[%s3691_s15] sm:$0xff] %vm2438_vm3, %v2430_v25  ;;  %v2431_v35 = vmax.f32 %v2423_v33, 0.0 }
 0x394   : > { %2442 = vst.msk [vmem:[%s3691_s15 + $0x18] sm:$0xff] %vm2438_vm3, %v2433_v20 }
 0x395   : > { %2440 = vst.msk [vmem:[%s3691_s15 + $0x8] sm:$0xff] %vm2438_vm3, %v2431_v35 }
 0x3a1   : > { %v2719_v22 = vpop.f32.mrb[4].mxu1 }
 0x3a2   : > { %v2384_v28 = vadd.f32 %v2719_v22, %v2645_v15  ;;  %v2375_v34 = vpop.f32.mrb[5].mxu1 }
 0x3a3   : > { %v2376_v39 = vadd.f32 %v2645_v15, %v2375_v34  ;;  %v2720_v40 = vpop.f32.mrb[6].mxu1 }
 0x3a4   : > { %v2428_v41 = vadd.f32 %v2411_v38, %v2384_v28  ;;  %v2387_v42 = vadd.f32 %v2720_v40, %v2645_v15  ;;  %v2378_v43 = vpop.f32.mrb[7].mxu1 }
 0x3a5   : > { %v2426_v47 = vadd.f32 %v2407_v36, %v2376_v39  ;;  %v2379_v48 = vadd.f32 %v2645_v15, %v2378_v43 }
 0x3a6   : > { %v2436_v8 = vmax.f32 %v2428_v41, 0.0  ;;  %v2429_v49 = vadd.f32 %v2413_v44, %v2387_v42 }
 0x3a7   : > { %v2434_v53 = vmax.f32 %v2426_v47, 0.0  ;;  %v2427_v54 = vadd.f32 %v2409_v16, %v2379_v48 }
 0x3a8   : > { %2445 = vst.msk [vmem:[%s3691_s15 + $0x30] sm:$0xff] %vm2438_vm3, %v2436_v8  ;;  %v2437_v37 = vmax.f32 %v2429_v49, 0.0 }
 0x3a9   : > { %2443 = vst.msk [vmem:[%s3691_s15 + $0x20] sm:$0xff] %vm2438_vm3, %v2434_v53  ;;  %v2435_v55 = vmax.f32 %v2427_v54, 0.0 }
 0x3aa   : > { %2446 = vst.msk [vmem:[%s3691_s15 + $0x38] sm:$0xff] %vm2438_vm3, %v2437_v37 }
 0x3ab   : > { %2444 = vst.msk [vmem:[%s3691_s15 + $0x28] sm:$0xff] %vm2438_vm3, %v2435_v55 }
 0x3ac   : > { %2807 = shalt.err (!%p2804_p3)
}
 0x3ad   : > { %s2808_s9 = scalar_lea.hbm %s3708_s6, 1024  ;;  %s2812_s14 = scalar_lea.hbm %s3767_s5, 2048 }
 0x3ae   : > { %p2809_p4 = scmp.ne.s32.totalorder %s3708_s6, %s2808_s9  ;;  %p2813_p9 = scmp.lt.u32.totalorder %s3708_s6, %s3767_s5 }
 0x3af   : > { %p2814_p10 = scmp.lt.u32.totalorder %s2812_s14, %s2808_s9  ;;  %p2816_p12 = scmp.lt.u32.totalorder %s2808_s9, %s3708_s6 }
 0x3b0   : > { %p2810_p7 = pnand %p2809_p4, %p2942_p5 }
 0x3b1   : > { %p2815_p11 = por %p2814_p10, %p2813_p9 }
 0x3b2   : > { %p2811_p8 = pneg %p2810_p7 }
 0x3b3   : > { %p2817_p13 = por %p2816_p12, %p2815_p11 }
 0x3b5   : > { %p2818_p0 = pnand %p2817_p13, %p2811_p8 }
 0x3b7   : > { %2821 = shalt.err (!%p2818_p0)
}
 0x3b8   : > { %s2873_s17 = smov 128  }
 0x3b9   : > { %2724 = dma.vmem_to_hbm [thread:$0]  (%p2942_p5), %s3712_s23, 1024, %s3708_s6, %s3720_s22, %s2873_s17, %s2873_s17, %s2860_s12  }
 0x3ba PF: > { %p2730_p1 = scmp.ge.s32.totalorder %s2856_s21, 2  ;;  %s2476_s25 = sand.u32 1, %s2844_s18  }
 0x3bb   : > { %s2477_s26 = scalar_lea.sflag [#allocation6], %s2476_s25 }
 0x3bc   : > { %p2727_p2 = pnand %p2730_p1, %p2946_p6 }
 0x3be   : > { %2839 = dma.done.wait (!%p2727_p2), %s2477_s26, 1024  }
 0x3bf   : > { %2841 = vsyncadd (!%p2727_p2), %s2477_s26, 4294966272  ;;  %p15_p3 = scmp.ge.s32.totalorder %s2929_s24, 4   ;;  %s3780_s18 = smov %s2848_s19 }
 0x3c0   : > { %s3781_s19 = smov %s2852_s20  ;;  %s3782_s20 = smov %s2940_s27 }
 0x3c1   : > { %s3783_s21 = smov %s2929_s24  ;;  %17 = sbr.rel (!%p15_p3) target bundleno = 3 (0x3), region = 83 }
 0x3c8   :  { %2482 = vsyncpa [#allocation6], 1 }
 0x3c9   :  { %2484 = vsyncpa [#allocation6 + $0x1], 1 }

</bundles_post_ra>
